<compile_context>
chip_gen: v6e
topology: v6e:2x2x1
jax: 0.10.0
libtpu: 0.0.40
codegen_flags: <defaults>
</compile_context>

<pallas_src>
import functools

import jax
import jax.numpy as jnp
from jax import lax
from jax.experimental import pallas as pl
from jax.experimental.pallas import tpu as pltpu


def _gelu_exact(x):
    # PyTorch nn.GELU() default = exact erf-based GELU.
    return 0.5 * x * (1.0 + lax.erf(x * (2.0 ** -0.5)))


def _layernorm(v, g, b, eps=1e-5):
    mu = jnp.mean(v, axis=-1, keepdims=True)
    var = jnp.mean(jnp.square(v - mu), axis=-1, keepdims=True)
    return (v - mu) * lax.rsqrt(var + eps) * g + b


def encoder_kernel(H, approx_recip,
                   x_ref,
                   ln1g, ln1b, wqkv, bqkv, wo, bo,
                   ln2g, ln2b, w1, b1, w2, b2,
                   out_ref, qkv_ref):
    n = pl.program_id(1)
    Tn = out_ref.shape[1]
    D = out_ref.shape[2]
    cdt = wqkv.dtype                      # matmul operand dtype (f32 or bf16)
    scale = (D / H) ** (-0.5)

    # ---- once per batch (n == 0): LN1 + fused Q/K/V projection for the whole
    #      sequence into a VMEM scratch resident across the query-tile axis. ----
    @pl.when(n == 0)
    def _():
        xf = x_ref[0].astype(jnp.float32)                      # (N, D)
        yf = _layernorm(xf, ln1g[...], ln1b[...])
        qkv = jnp.dot(yf.astype(cdt), wqkv[...],
                      preferred_element_type=jnp.float32) + bqkv[...]
        qkv_ref[...] = qkv.astype(qkv_ref.dtype)               # (N, 3*H*D)

    row0 = pl.multiple_of(n * Tn, Tn)
    x = x_ref[0, pl.ds(row0, Tn), :].astype(jnp.float32)       # (Tn, D) residual rows

    # ---- per-head attention on VMEM-resident Q/K/V (small H, unrolled). ----
    kv_off = H * D
    heads = []
    for h in range(H):
        q = qkv_ref[pl.ds(row0, Tn), h * D:(h + 1) * D]                      # (Tn, D)
        k = qkv_ref[:, kv_off + 2 * h * D: kv_off + (2 * h + 1) * D]         # (N, D)
        v = qkv_ref[:, kv_off + (2 * h + 1) * D: kv_off + (2 * h + 2) * D]   # (N, D)
        s = jnp.einsum("qd,kd->qk", q, k,
                       preferred_element_type=jnp.float32) * scale
        s = s - jnp.max(s, axis=-1, keepdims=True)
        p = jnp.exp(s)
        denom = jnp.sum(p, axis=-1, keepdims=True)
        if approx_recip:
            p = p * pl.reciprocal(denom, approx=True)          # EUP slot
        else:
            p = p / denom                                      # exact path
        heads.append(jnp.dot(p.astype(cdt), v,
                             preferred_element_type=jnp.float32))
    att = jnp.concatenate(heads, axis=-1)                      # (Tn, H*D)

    # ---- fused output projection (single K = H*D matmul) + residual 1. ----
    y1 = jnp.dot(att.astype(cdt), wo[...],
                 preferred_element_type=jnp.float32) + bo[...] + x

    # ---- LayerNorm2 + MLP (Linear -> GELU -> Linear -> GELU). ----
    y2 = _layernorm(y1, ln2g[...], ln2b[...])
    m = _gelu_exact(jnp.dot(y2.astype(cdt), w1[...],
                            preferred_element_type=jnp.float32) + b1[...])
    m = _gelu_exact(jnp.dot(m.astype(cdt), w2[...],
                            preferred_element_type=jnp.float32) + b2[...])

    out_ref[0] = (m + y1).astype(out_ref.dtype)                # residual 2


def encoder_forward(x, params, *, tile_n=None, fast_math=True):
    B, N, D = x.shape
    H = params["wqkv"].shape[0]
    mlp = params["w1"].shape[1]

    if tile_n is None:
        tile_n = N
    assert N % tile_n == 0 and (tile_n % 8 == 0 or tile_n == N)
    n_tiles = N // tile_n

    cdt = jnp.bfloat16 if fast_math else jnp.float32

    # --- wrapper-side weight layout prep: fuse the per-head projections into
    #     one (D, 3*H*D) weight: [Q_0..Q_{H-1} | K_0 V_0 K_1 V_1 ...]. ---
    wqkv, bqkv = params["wqkv"], params["bqkv"]               # (H,D,3D), (H,1,3D)
    wq = jnp.concatenate([wqkv[h, :, :D] for h in range(H)], axis=-1)    # (D, H*D)
    bq = jnp.concatenate([bqkv[h, :, :D] for h in range(H)], axis=-1)    # (1, H*D)
    wkv = jnp.concatenate([wqkv[h, :, D:] for h in range(H)], axis=-1)   # (D, 2*H*D)
    bkv = jnp.concatenate([bqkv[h, :, D:] for h in range(H)], axis=-1)   # (1, 2*H*D)
    w_all = jnp.concatenate([wq, wkv], axis=-1).astype(cdt)              # (D, 3*H*D)
    b_all = jnp.concatenate([bq, bkv], axis=-1)                          # (1, 3*H*D) f32

    # Matmul weights in compute dtype; biases / LN params stay f32.
    wo = params["wo"].astype(cdt)
    w1 = params["w1"].astype(cdt)
    w2 = params["w2"].astype(cdt)

    operands = (x,
                params["ln1_g"], params["ln1_b"],
                w_all, b_all, wo, params["bo"],
                params["ln2_g"], params["ln2_b"],
                w1, params["b1"], w2, params["b2"])

    def const(arr):                       # resident block, constant index_map
        return pl.BlockSpec(arr.shape, lambda b, n: (0, 0))

    in_specs = [
        pl.BlockSpec((1, N, D), lambda b, n: (b, 0, 0)),       # full x per batch
    ] + [const(a) for a in operands[1:]]

    out_spec = pl.BlockSpec((1, tile_n, D), lambda b, n: (b, n, 0))

    # --- VMEM budget (blocks/weights double-buffered) + headroom. ---
    const_bytes = sum(int(a.size) * a.dtype.itemsize for a in operands[1:])
    block_bytes = (N * D + tile_n * D) * x.dtype.itemsize
    scratch_bytes = N * 3 * H * D * jnp.dtype(cdt).itemsize
    vmem_need = 2 * (const_bytes + block_bytes) + scratch_bytes
    vmem_limit = int(min(max(vmem_need + (8 << 20), 32 << 20), 64 << 20))

    # --- advisory cost estimate. ---
    flops = 2 * B * N * D * (3 * H * D)          # fused QKV projection
    flops += 2 * 2 * B * H * N * N * D           # scores + PV
    flops += 2 * B * N * (H * D) * D             # output projection
    flops += 2 * 2 * B * N * D * mlp             # MLP
    transcendentals = B * (H * N * N + N * (mlp + 2 * D))
    bytes_accessed = 2 * int(x.size) * x.dtype.itemsize + const_bytes

    kern = functools.partial(encoder_kernel, H, bool(fast_math))
    return pl.pallas_call(
        kern,
        out_shape=jax.ShapeDtypeStruct((B, N, D), x.dtype),
        grid=(B, n_tiles),
        in_specs=in_specs,
        out_specs=out_spec,
        scratch_shapes=[pltpu.VMEM((N, 3 * H * D), cdt)],
        compiler_params=pltpu.CompilerParams(
            dimension_semantics=("parallel", "arbitrary"),
            vmem_limit_bytes=vmem_limit),
        cost_estimate=pl.CostEstimate(flops=int(flops),
                                      transcendentals=int(transcendentals),
                                      bytes_accessed=int(bytes_accessed)),
    )(*operands)


def encoder_ref(x, params):
    """Pure-JAX reference mirroring the PyTorch forward (full precision)."""
    D = x.shape[-1]
    H = params["wqkv"].shape[0]
    hp = jax.lax.Precision.HIGHEST

    def ln(v, g, b):
        mu = v.mean(-1, keepdims=True)
        var = ((v - mu) ** 2).mean(-1, keepdims=True)
        return (v - mu) / jnp.sqrt(var + 1e-5) * g + b

    y = ln(x, params["ln1_g"][0], params["ln1_b"][0])
    scale = (D / H) ** (-0.5)
    heads = []
    for h in range(H):
        qkv = jnp.einsum("bnd,de->bne", y, params["wqkv"][h],
                         precision=hp) + params["bqkv"][h]
        q, k, v = qkv[..., :D], qkv[..., D:2 * D], qkv[..., 2 * D:]
        s = jnp.einsum("bnd,bmd->bnm", q, k, precision=hp) * scale
        p = jax.nn.softmax(s, axis=-1)
        heads.append(jnp.einsum("bnm,bmd->bnd", p, v, precision=hp))
    cat = jnp.concatenate(heads, axis=-1)
    y1 = jnp.einsum("bne,ed->bnd", cat, params["wo"],
                    precision=hp) + params["bo"][0] + x
    y2 = ln(y1, params["ln2_g"][0], params["ln2_b"][0])
    m = jax.nn.gelu(jnp.einsum("bnd,dm->bnm", y2, params["w1"],
                               precision=hp) + params["b1"][0], approximate=False)
    m = jax.nn.gelu(jnp.einsum("bnm,md->bnd", m, params["w2"],
                               precision=hp) + params["b2"][0], approximate=False)
    return m + y1


def init_params(key, D, H, mlp_size):
    ks = jax.random.split(key, 8)
    s = 0.05
    return {
        "ln1_g": jnp.ones((1, D), jnp.float32),
        "ln1_b": jnp.zeros((1, D), jnp.float32),
        "wqkv": s * jax.random.normal(ks[0], (H, D, 3 * D), jnp.float32),
        "bqkv": s * jax.random.normal(ks[1], (H, 1, 3 * D), jnp.float32),
        "wo": s * jax.random.normal(ks[2], (H * D, D), jnp.float32),
        "bo": s * jax.random.normal(ks[3], (1, D), jnp.float32),
        "ln2_g": jnp.ones((1, D), jnp.float32),
        "ln2_b": jnp.zeros((1, D), jnp.float32),
        "w1": s * jax.random.normal(ks[4], (D, mlp_size), jnp.float32),
        "b1": s * jax.random.normal(ks[5], (1, mlp_size), jnp.float32),
        "w2": s * jax.random.normal(ks[6], (mlp_size, D), jnp.float32),
        "b2": s * jax.random.normal(ks[7], (1, D), jnp.float32),
    }


if __name__ == "__main__":
    # Lane-dense small config: D multiple of 128, two query tiles per batch so
    # the (parallel, arbitrary) grid has 4 steps (feeds megacore + pipeline).
    B, N, D, H, MLP = 2, 16, 128, 4, 256
    TILE_N = 8

    key = jax.random.PRNGKey(0)
    kx, kp = jax.random.split(key)
    x = jax.random.normal(kx, (B, N, D), jnp.float32)
    params = init_params(kp, D, H, MLP)

    ref = encoder_ref(x, params)

    # Exact path: f32 matmul operands, exact softmax division -> tight tolerance.
    out_f32 = jax.block_until_ready(
        encoder_forward(x, params, tile_n=TILE_N, fast_math=False))
    assert out_f32.shape == (B, N, D)
    assert jnp.allclose(out_f32, ref, atol=2e-4, rtol=2e-4), (
        float(jnp.max(jnp.abs(out_f32 - ref))))

    # Fast path: bf16 MXU operands (f32 accumulate) + approx reciprocal.
    out_fast = jax.block_until_ready(
        encoder_forward(x, params, tile_n=TILE_N, fast_math=True))
    assert jnp.allclose(out_fast, ref, atol=4e-2, rtol=4e-2), (
        float(jnp.max(jnp.abs(out_fast - ref))))

    print("KERNEL_OK")
</pallas_src>

<mosaic_0001>
module attributes {stable_mosaic.version = 11 : i64} {
  func.func @encoder_kernel(%arg0: i32, %arg1: i32, %arg2: memref<1x16x128xf32, #tpu.memory_space<vmem>>, %arg3: memref<1x128xf32, #tpu.memory_space<vmem>>, %arg4: memref<1x128xf32, #tpu.memory_space<vmem>>, %arg5: memref<128x1536xf32, #tpu.memory_space<vmem>>, %arg6: memref<1x1536xf32, #tpu.memory_space<vmem>>, %arg7: memref<512x128xf32, #tpu.memory_space<vmem>>, %arg8: memref<1x128xf32, #tpu.memory_space<vmem>>, %arg9: memref<1x128xf32, #tpu.memory_space<vmem>>, %arg10: memref<1x128xf32, #tpu.memory_space<vmem>>, %arg11: memref<128x256xf32, #tpu.memory_space<vmem>>, %arg12: memref<1x256xf32, #tpu.memory_space<vmem>>, %arg13: memref<256x128xf32, #tpu.memory_space<vmem>>, %arg14: memref<1x128xf32, #tpu.memory_space<vmem>>, %arg15: memref<1x8x128xf32, #tpu.memory_space<vmem>>, %arg16: memref<16x1536xf32, #tpu.memory_space<vmem>>) attributes {dimension_semantics = [#tpu.dimension_semantics<parallel>, #tpu.dimension_semantics<arbitrary>], iteration_bounds = array<i64: 2, 2>, scalar_prefetch = 0 : i64, scratch_operands = 1 : i64, tpu.core_type = #tpu.core_type<tc>, window_params = [{transform_indices = @transform_0, window_bounds = array<i64: 1, 16, 128>}, {pipeline_mode = #tpu.pipeline_mode<synchronous>, transform_indices = @transform_1, window_bounds = array<i64: 1, 128>}, {pipeline_mode = #tpu.pipeline_mode<synchronous>, transform_indices = @transform_2, window_bounds = array<i64: 1, 128>}, {pipeline_mode = #tpu.pipeline_mode<synchronous>, transform_indices = @transform_3, window_bounds = array<i64: 128, 1536>}, {pipeline_mode = #tpu.pipeline_mode<synchronous>, transform_indices = @transform_4, window_bounds = array<i64: 1, 1536>}, {pipeline_mode = #tpu.pipeline_mode<synchronous>, transform_indices = @transform_5, window_bounds = array<i64: 512, 128>}, {pipeline_mode = #tpu.pipeline_mode<synchronous>, transform_indices = @transform_6, window_bounds = array<i64: 1, 128>}, {pipeline_mode = #tpu.pipeline_mode<synchronous>, transform_indices = @transform_7, window_bounds = array<i64: 1, 128>}, {pipeline_mode = #tpu.pipeline_mode<synchronous>, transform_indices = @transform_8, window_bounds = array<i64: 1, 128>}, {pipeline_mode = #tpu.pipeline_mode<synchronous>, transform_indices = @transform_9, window_bounds = array<i64: 128, 256>}, {pipeline_mode = #tpu.pipeline_mode<synchronous>, transform_indices = @transform_10, window_bounds = array<i64: 1, 256>}, {pipeline_mode = #tpu.pipeline_mode<synchronous>, transform_indices = @transform_11, window_bounds = array<i64: 256, 128>}, {pipeline_mode = #tpu.pipeline_mode<synchronous>, transform_indices = @transform_12, window_bounds = array<i64: 1, 128>}, {transform_indices = @transform_13, window_bounds = array<i64: 1, 8, 128>}]} {
    %c0_i32 = arith.constant 0 : i32
    %0 = arith.cmpi eq, %arg1, %c0_i32 : i32
    %1 = arith.extui %0 : i1 to i32
    %c0_i32_0 = arith.constant 0 : i32
    %2 = arith.cmpi ne, %1, %c0_i32_0 : i32
    scf.if %2 {
      %c0_63 = arith.constant 0 : index
      %c0_64 = arith.constant 0 : index
      %c0_65 = arith.constant 0 : index
      %137 = vector.load %arg2[%c0_63, %c0_64, %c0_65] : memref<1x16x128xf32, #tpu.memory_space<vmem>>, vector<1x16x128xf32>
      %138 = vector.shape_cast %137 : vector<1x16x128xf32> to vector<16x128xf32>
      %c0_66 = arith.constant 0 : index
      %c0_67 = arith.constant 0 : index
      %139 = vector.load %arg3[%c0_66, %c0_67] : memref<1x128xf32, #tpu.memory_space<vmem>>, vector<1x128xf32>
      %c0_68 = arith.constant 0 : index
      %c0_69 = arith.constant 0 : index
      %140 = vector.load %arg4[%c0_68, %c0_69] : memref<1x128xf32, #tpu.memory_space<vmem>>, vector<1x128xf32>
      %cst_70 = arith.constant dense<0.000000e+00> : vector<16xf32>
      %141 = vector.multi_reduction <add>, %138, %cst_70 [1] : vector<16x128xf32> to vector<16xf32>
      %142 = vector.shape_cast %141 : vector<16xf32> to vector<16x1xf32>
      %cst_71 = arith.constant 1.280000e+02 : f32
      %143 = vector.broadcast %cst_71 : f32 to vector<16x1xf32>
      %144 = arith.divf %142, %143 : vector<16x1xf32>
      %145 = vector.broadcast %144 : vector<16x1xf32> to vector<16x128xf32>
      %146 = arith.subf %138, %145 : vector<16x128xf32>
      %147 = arith.mulf %146, %146 : vector<16x128xf32>
      %cst_72 = arith.constant dense<0.000000e+00> : vector<16xf32>
      %148 = vector.multi_reduction <add>, %147, %cst_72 [1] : vector<16x128xf32> to vector<16xf32>
      %149 = vector.shape_cast %148 : vector<16xf32> to vector<16x1xf32>
      %cst_73 = arith.constant 1.280000e+02 : f32
      %150 = vector.broadcast %cst_73 : f32 to vector<16x1xf32>
      %151 = arith.divf %149, %150 : vector<16x1xf32>
      %152 = vector.broadcast %144 : vector<16x1xf32> to vector<16x128xf32>
      %153 = arith.subf %138, %152 : vector<16x128xf32>
      %cst_74 = arith.constant 9.99999974E-6 : f32
      %154 = vector.broadcast %cst_74 : f32 to vector<16x1xf32>
      %155 = arith.addf %151, %154 : vector<16x1xf32>
      %156 = math.rsqrt %155 : vector<16x1xf32>
      %157 = vector.broadcast %156 : vector<16x1xf32> to vector<16x128xf32>
      %158 = arith.mulf %153, %157 : vector<16x128xf32>
      %159 = vector.broadcast %139 : vector<1x128xf32> to vector<16x128xf32>
      %160 = arith.mulf %158, %159 : vector<16x128xf32>
      %161 = vector.broadcast %140 : vector<1x128xf32> to vector<16x128xf32>
      %162 = arith.addf %160, %161 : vector<16x128xf32>
      %c0_75 = arith.constant 0 : index
      %c0_76 = arith.constant 0 : index
      %163 = vector.load %arg5[%c0_75, %c0_76] : memref<128x1536xf32, #tpu.memory_space<vmem>>, vector<128x1536xf32>
      %cst_77 = arith.constant dense<0.000000e+00> : vector<16x1536xf32>
      %164 = tpu.matmul %162, %163, %cst_77 {dimension_numbers = #tpu.dot_dimension_numbers<[1], [0], [0], [1], [0, 0, 1, 1], [], []>} : vector<16x128xf32>, vector<128x1536xf32>, vector<16x1536xf32> -> vector<16x1536xf32>
      %c0_78 = arith.constant 0 : index
      %c0_79 = arith.constant 0 : index
      %165 = vector.load %arg6[%c0_78, %c0_79] : memref<1x1536xf32, #tpu.memory_space<vmem>>, vector<1x1536xf32>
      %166 = vector.broadcast %165 : vector<1x1536xf32> to vector<16x1536xf32>
      %167 = arith.addf %164, %166 : vector<16x1536xf32>
      %c0_80 = arith.constant 0 : index
      %c0_81 = arith.constant 0 : index
      %168 = vector.load %arg16[%c0_80, %c0_81] : memref<16x1536xf32, #tpu.memory_space<vmem>>, vector<16x1536xf32>
      tpu.vector_store %arg16[%c0_80, %c0_81], %167 {strides = array<i32>} : memref<16x1536xf32, #tpu.memory_space<vmem>>, vector<16x1536xf32>,
    } else {
    }
    %c8_i32 = arith.constant 8 : i32
    %3 = arith.muli %arg1, %c8_i32 : i32
    %4 = tpu.assume_multiple %3, 8 : i32
    %c0 = arith.constant 0 : index
    %5 = arith.index_cast %4 : i32 to index
    %c0_1 = arith.constant 0 : index
    %6 = vector.load %arg2[%c0, %5, %c0_1] : memref<1x16x128xf32, #tpu.memory_space<vmem>>, vector<1x8x128xf32>
    %7 = vector.shape_cast %6 : vector<1x8x128xf32> to vector<8x128xf32>
    %8 = arith.index_cast %4 : i32 to index
    %c0_2 = arith.constant 0 : index
    %9 = vector.load %arg16[%8, %c0_2] : memref<16x1536xf32, #tpu.memory_space<vmem>>, vector<8x128xf32>
    %c0_3 = arith.constant 0 : index
    %c512 = arith.constant 512 : index
    %10 = vector.load %arg16[%c0_3, %c512] : memref<16x1536xf32, #tpu.memory_space<vmem>>, vector<16x128xf32>
    %c0_4 = arith.constant 0 : index
    %c640 = arith.constant 640 : index
    %11 = vector.load %arg16[%c0_4, %c640] : memref<16x1536xf32, #tpu.memory_space<vmem>>, vector<16x128xf32>
    "tpu.trace_start"() <{level = 10 : i32, message = "qd,kd->qk"}> : () -> ()
    %cst = arith.constant dense<0.000000e+00> : vector<8x16xf32>
    %12 = tpu.matmul %9, %10, %cst {dimension_numbers = #tpu.dot_dimension_numbers<[1], [1], [0], [0], [0, 0, 1, 0], [], []>} : vector<8x128xf32>, vector<16x128xf32>, vector<8x16xf32> -> vector<8x16xf32>
    "tpu.trace_stop"() : () -> ()
    %cst_5 = arith.constant 0.176776692 : f32
    %13 = vector.broadcast %cst_5 : f32 to vector<8x16xf32>
    %14 = arith.mulf %12, %13 : vector<8x16xf32>
    %cst_6 = arith.constant dense<0xFF800000> : vector<8xf32>
    %15 = vector.multi_reduction <maximumf>, %14, %cst_6 [1] : vector<8x16xf32> to vector<8xf32>
    %16 = vector.shape_cast %15 : vector<8xf32> to vector<8x1xf32>
    %17 = vector.broadcast %16 : vector<8x1xf32> to vector<8x16xf32>
    %18 = arith.subf %14, %17 : vector<8x16xf32>
    %19 = math.exp %18 : vector<8x16xf32>
    %cst_7 = arith.constant dense<0.000000e+00> : vector<8xf32>
    %20 = vector.multi_reduction <add>, %19, %cst_7 [1] : vector<8x16xf32> to vector<8xf32>
    %21 = vector.shape_cast %20 : vector<8xf32> to vector<8x1xf32>
    %22 = vector.broadcast %21 : vector<8x1xf32> to vector<8x16xf32>
    %23 = arith.divf %19, %22 : vector<8x16xf32>
    %cst_8 = arith.constant dense<0.000000e+00> : vector<8x128xf32>
    %24 = tpu.matmul %23, %11, %cst_8 {dimension_numbers = #tpu.dot_dimension_numbers<[1], [0], [0], [1], [0, 0, 1, 1], [], []>} : vector<8x16xf32>, vector<16x128xf32>, vector<8x128xf32> -> vector<8x128xf32>
    %25 = arith.index_cast %4 : i32 to index
    %c128 = arith.constant 128 : index
    %26 = vector.load %arg16[%25, %c128] : memref<16x1536xf32, #tpu.memory_space<vmem>>, vector<8x128xf32>
    %c0_9 = arith.constant 0 : index
    %c768 = arith.constant 768 : index
    %27 = vector.load %arg16[%c0_9, %c768] : memref<16x1536xf32, #tpu.memory_space<vmem>>, vector<16x128xf32>
    %c0_10 = arith.constant 0 : index
    %c896 = arith.constant 896 : index
    %28 = vector.load %arg16[%c0_10, %c896] : memref<16x1536xf32, #tpu.memory_space<vmem>>, vector<16x128xf32>
    "tpu.trace_start"() <{level = 10 : i32, message = "qd,kd->qk"}> : () -> ()
    %cst_11 = arith.constant dense<0.000000e+00> : vector<8x16xf32>
    %29 = tpu.matmul %26, %27, %cst_11 {dimension_numbers = #tpu.dot_dimension_numbers<[1], [1], [0], [0], [0, 0, 1, 0], [], []>} : vector<8x128xf32>, vector<16x128xf32>, vector<8x16xf32> -> vector<8x16xf32>
    "tpu.trace_stop"() : () -> ()
    %cst_12 = arith.constant 0.176776692 : f32
    %30 = vector.broadcast %cst_12 : f32 to vector<8x16xf32>
    %31 = arith.mulf %29, %30 : vector<8x16xf32>
    %cst_13 = arith.constant dense<0xFF800000> : vector<8xf32>
    %32 = vector.multi_reduction <maximumf>, %31, %cst_13 [1] : vector<8x16xf32> to vector<8xf32>
    %33 = vector.shape_cast %32 : vector<8xf32> to vector<8x1xf32>
    %34 = vector.broadcast %33 : vector<8x1xf32> to vector<8x16xf32>
    %35 = arith.subf %31, %34 : vector<8x16xf32>
    %36 = math.exp %35 : vector<8x16xf32>
    %cst_14 = arith.constant dense<0.000000e+00> : vector<8xf32>
    %37 = vector.multi_reduction <add>, %36, %cst_14 [1] : vector<8x16xf32> to vector<8xf32>
    %38 = vector.shape_cast %37 : vector<8xf32> to vector<8x1xf32>
    %39 = vector.broadcast %38 : vector<8x1xf32> to vector<8x16xf32>
    %40 = arith.divf %36, %39 : vector<8x16xf32>
    %cst_15 = arith.constant dense<0.000000e+00> : vector<8x128xf32>
    %41 = tpu.matmul %40, %28, %cst_15 {dimension_numbers = #tpu.dot_dimension_numbers<[1], [0], [0], [1], [0, 0, 1, 1], [], []>} : vector<8x16xf32>, vector<16x128xf32>, vector<8x128xf32> -> vector<8x128xf32>
    %42 = arith.index_cast %4 : i32 to index
    %c256 = arith.constant 256 : index
    %43 = vector.load %arg16[%42, %c256] : memref<16x1536xf32, #tpu.memory_space<vmem>>, vector<8x128xf32>
    %c0_16 = arith.constant 0 : index
    %c1024 = arith.constant 1024 : index
    %44 = vector.load %arg16[%c0_16, %c1024] : memref<16x1536xf32, #tpu.memory_space<vmem>>, vector<16x128xf32>
    %c0_17 = arith.constant 0 : index
    %c1152 = arith.constant 1152 : index
    %45 = vector.load %arg16[%c0_17, %c1152] : memref<16x1536xf32, #tpu.memory_space<vmem>>, vector<16x128xf32>
    "tpu.trace_start"() <{level = 10 : i32, message = "qd,kd->qk"}> : () -> ()
    %cst_18 = arith.constant dense<0.000000e+00> : vector<8x16xf32>
    %46 = tpu.matmul %43, %44, %cst_18 {dimension_numbers = #tpu.dot_dimension_numbers<[1], [1], [0], [0], [0, 0, 1, 0], [], []>} : vector<8x128xf32>, vector<16x128xf32>, vector<8x16xf32> -> vector<8x16xf32>
    "tpu.trace_stop"() : () -> ()
    %cst_19 = arith.constant 0.176776692 : f32
    %47 = vector.broadcast %cst_19 : f32 to vector<8x16xf32>
    %48 = arith.mulf %46, %47 : vector<8x16xf32>
    %cst_20 = arith.constant dense<0xFF800000> : vector<8xf32>
    %49 = vector.multi_reduction <maximumf>, %48, %cst_20 [1] : vector<8x16xf32> to vector<8xf32>
    %50 = vector.shape_cast %49 : vector<8xf32> to vector<8x1xf32>
    %51 = vector.broadcast %50 : vector<8x1xf32> to vector<8x16xf32>
    %52 = arith.subf %48, %51 : vector<8x16xf32>
    %53 = math.exp %52 : vector<8x16xf32>
    %cst_21 = arith.constant dense<0.000000e+00> : vector<8xf32>
    %54 = vector.multi_reduction <add>, %53, %cst_21 [1] : vector<8x16xf32> to vector<8xf32>
    %55 = vector.shape_cast %54 : vector<8xf32> to vector<8x1xf32>
    %56 = vector.broadcast %55 : vector<8x1xf32> to vector<8x16xf32>
    %57 = arith.divf %53, %56 : vector<8x16xf32>
    %cst_22 = arith.constant dense<0.000000e+00> : vector<8x128xf32>
    %58 = tpu.matmul %57, %45, %cst_22 {dimension_numbers = #tpu.dot_dimension_numbers<[1], [0], [0], [1], [0, 0, 1, 1], [], []>} : vector<8x16xf32>, vector<16x128xf32>, vector<8x128xf32> -> vector<8x128xf32>
    %59 = arith.index_cast %4 : i32 to index
    %c384 = arith.constant 384 : index
    %60 = vector.load %arg16[%59, %c384] : memref<16x1536xf32, #tpu.memory_space<vmem>>, vector<8x128xf32>
    %c0_23 = arith.constant 0 : index
    %c1280 = arith.constant 1280 : index
    %61 = vector.load %arg16[%c0_23, %c1280] : memref<16x1536xf32, #tpu.memory_space<vmem>>, vector<16x128xf32>
    %c0_24 = arith.constant 0 : index
    %c1408 = arith.constant 1408 : index
    %62 = vector.load %arg16[%c0_24, %c1408] : memref<16x1536xf32, #tpu.memory_space<vmem>>, vector<16x128xf32>
    "tpu.trace_start"() <{level = 10 : i32, message = "qd,kd->qk"}> : () -> ()
    %cst_25 = arith.constant dense<0.000000e+00> : vector<8x16xf32>
    %63 = tpu.matmul %60, %61, %cst_25 {dimension_numbers = #tpu.dot_dimension_numbers<[1], [1], [0], [0], [0, 0, 1, 0], [], []>} : vector<8x128xf32>, vector<16x128xf32>, vector<8x16xf32> -> vector<8x16xf32>
    "tpu.trace_stop"() : () -> ()
    %cst_26 = arith.constant 0.176776692 : f32
    %64 = vector.broadcast %cst_26 : f32 to vector<8x16xf32>
    %65 = arith.mulf %63, %64 : vector<8x16xf32>
    %cst_27 = arith.constant dense<0xFF800000> : vector<8xf32>
    %66 = vector.multi_reduction <maximumf>, %65, %cst_27 [1] : vector<8x16xf32> to vector<8xf32>
    %67 = vector.shape_cast %66 : vector<8xf32> to vector<8x1xf32>
    %68 = vector.broadcast %67 : vector<8x1xf32> to vector<8x16xf32>
    %69 = arith.subf %65, %68 : vector<8x16xf32>
    %70 = math.exp %69 : vector<8x16xf32>
    %cst_28 = arith.constant dense<0.000000e+00> : vector<8xf32>
    %71 = vector.multi_reduction <add>, %70, %cst_28 [1] : vector<8x16xf32> to vector<8xf32>
    %72 = vector.shape_cast %71 : vector<8xf32> to vector<8x1xf32>
    %73 = vector.broadcast %72 : vector<8x1xf32> to vector<8x16xf32>
    %74 = arith.divf %70, %73 : vector<8x16xf32>
    %cst_29 = arith.constant dense<0.000000e+00> : vector<8x128xf32>
    %75 = tpu.matmul %74, %62, %cst_29 {dimension_numbers = #tpu.dot_dimension_numbers<[1], [0], [0], [1], [0, 0, 1, 1], [], []>} : vector<8x16xf32>, vector<16x128xf32>, vector<8x128xf32> -> vector<8x128xf32>
    %76 = tpu.concatenate %24, %41, %58, %75 in 1 : vector<8x128xf32>, vector<8x128xf32>, vector<8x128xf32>, vector<8x128xf32> -> vector<8x512xf32>
    %c0_30 = arith.constant 0 : index
    %c0_31 = arith.constant 0 : index
    %77 = vector.load %arg7[%c0_30, %c0_31] : memref<512x128xf32, #tpu.memory_space<vmem>>, vector<512x128xf32>
    %cst_32 = arith.constant dense<0.000000e+00> : vector<8x128xf32>
    %78 = tpu.matmul %76, %77, %cst_32 {dimension_numbers = #tpu.dot_dimension_numbers<[1], [0], [0], [1], [0, 0, 1, 1], [], []>} : vector<8x512xf32>, vector<512x128xf32>, vector<8x128xf32> -> vector<8x128xf32>
    %c0_33 = arith.constant 0 : index
    %c0_34 = arith.constant 0 : index
    %79 = vector.load %arg8[%c0_33, %c0_34] : memref<1x128xf32, #tpu.memory_space<vmem>>, vector<1x128xf32>
    %80 = vector.broadcast %79 : vector<1x128xf32> to vector<8x128xf32>
    %81 = arith.addf %78, %80 : vector<8x128xf32>
    %82 = arith.addf %81, %7 : vector<8x128xf32>
    %c0_35 = arith.constant 0 : index
    %c0_36 = arith.constant 0 : index
    %83 = vector.load %arg9[%c0_35, %c0_36] : memref<1x128xf32, #tpu.memory_space<vmem>>, vector<1x128xf32>
    %c0_37 = arith.constant 0 : index
    %c0_38 = arith.constant 0 : index
    %84 = vector.load %arg10[%c0_37, %c0_38] : memref<1x128xf32, #tpu.memory_space<vmem>>, vector<1x128xf32>
    %cst_39 = arith.constant dense<0.000000e+00> : vector<8xf32>
    %85 = vector.multi_reduction <add>, %82, %cst_39 [1] : vector<8x128xf32> to vector<8xf32>
    %86 = vector.shape_cast %85 : vector<8xf32> to vector<8x1xf32>
    %cst_40 = arith.constant 1.280000e+02 : f32
    %87 = vector.broadcast %cst_40 : f32 to vector<8x1xf32>
    %88 = arith.divf %86, %87 : vector<8x1xf32>
    %89 = vector.broadcast %88 : vector<8x1xf32> to vector<8x128xf32>
    %90 = arith.subf %82, %89 : vector<8x128xf32>
    %91 = arith.mulf %90, %90 : vector<8x128xf32>
    %cst_41 = arith.constant dense<0.000000e+00> : vector<8xf32>
    %92 = vector.multi_reduction <add>, %91, %cst_41 [1] : vector<8x128xf32> to vector<8xf32>
    %93 = vector.shape_cast %92 : vector<8xf32> to vector<8x1xf32>
    %cst_42 = arith.constant 1.280000e+02 : f32
    %94 = vector.broadcast %cst_42 : f32 to vector<8x1xf32>
    %95 = arith.divf %93, %94 : vector<8x1xf32>
    %96 = vector.broadcast %88 : vector<8x1xf32> to vector<8x128xf32>
    %97 = arith.subf %82, %96 : vector<8x128xf32>
    %cst_43 = arith.constant 9.99999974E-6 : f32
    %98 = vector.broadcast %cst_43 : f32 to vector<8x1xf32>
    %99 = arith.addf %95, %98 : vector<8x1xf32>
    %100 = math.rsqrt %99 : vector<8x1xf32>
    %101 = vector.broadcast %100 : vector<8x1xf32> to vector<8x128xf32>
    %102 = arith.mulf %97, %101 : vector<8x128xf32>
    %103 = vector.broadcast %83 : vector<1x128xf32> to vector<8x128xf32>
    %104 = arith.mulf %102, %103 : vector<8x128xf32>
    %105 = vector.broadcast %84 : vector<1x128xf32> to vector<8x128xf32>
    %106 = arith.addf %104, %105 : vector<8x128xf32>
    %c0_44 = arith.constant 0 : index
    %c0_45 = arith.constant 0 : index
    %107 = vector.load %arg11[%c0_44, %c0_45] : memref<128x256xf32, #tpu.memory_space<vmem>>, vector<128x256xf32>
    %cst_46 = arith.constant dense<0.000000e+00> : vector<8x256xf32>
    %108 = tpu.matmul %106, %107, %cst_46 {dimension_numbers = #tpu.dot_dimension_numbers<[1], [0], [0], [1], [0, 0, 1, 1], [], []>} : vector<8x128xf32>, vector<128x256xf32>, vector<8x256xf32> -> vector<8x256xf32>
    %c0_47 = arith.constant 0 : index
    %c0_48 = arith.constant 0 : index
    %109 = vector.load %arg12[%c0_47, %c0_48] : memref<1x256xf32, #tpu.memory_space<vmem>>, vector<1x256xf32>
    %110 = vector.broadcast %109 : vector<1x256xf32> to vector<8x256xf32>
    %111 = arith.addf %108, %110 : vector<8x256xf32>
    %cst_49 = arith.constant 5.000000e-01 : f32
    %112 = vector.broadcast %cst_49 : f32 to vector<8x256xf32>
    %113 = arith.mulf %112, %111 : vector<8x256xf32>
    %cst_50 = arith.constant 0.707106769 : f32
    %114 = vector.broadcast %cst_50 : f32 to vector<8x256xf32>
    %115 = arith.mulf %111, %114 : vector<8x256xf32>
    %116 = math.erf %115 : vector<8x256xf32>
    %cst_51 = arith.constant 1.000000e+00 : f32
    %117 = vector.broadcast %cst_51 : f32 to vector<8x256xf32>
    %118 = arith.addf %117, %116 : vector<8x256xf32>
    %119 = arith.mulf %113, %118 : vector<8x256xf32>
    %c0_52 = arith.constant 0 : index
    %c0_53 = arith.constant 0 : index
    %120 = vector.load %arg13[%c0_52, %c0_53] : memref<256x128xf32, #tpu.memory_space<vmem>>, vector<256x128xf32>
    %cst_54 = arith.constant dense<0.000000e+00> : vector<8x128xf32>
    %121 = tpu.matmul %119, %120, %cst_54 {dimension_numbers = #tpu.dot_dimension_numbers<[1], [0], [0], [1], [0, 0, 1, 1], [], []>} : vector<8x256xf32>, vector<256x128xf32>, vector<8x128xf32> -> vector<8x128xf32>
    %c0_55 = arith.constant 0 : index
    %c0_56 = arith.constant 0 : index
    %122 = vector.load %arg14[%c0_55, %c0_56] : memref<1x128xf32, #tpu.memory_space<vmem>>, vector<1x128xf32>
    %123 = vector.broadcast %122 : vector<1x128xf32> to vector<8x128xf32>
    %124 = arith.addf %121, %123 : vector<8x128xf32>
    %cst_57 = arith.constant 5.000000e-01 : f32
    %125 = vector.broadcast %cst_57 : f32 to vector<8x128xf32>
    %126 = arith.mulf %125, %124 : vector<8x128xf32>
    %cst_58 = arith.constant 0.707106769 : f32
    %127 = vector.broadcast %cst_58 : f32 to vector<8x128xf32>
    %128 = arith.mulf %124, %127 : vector<8x128xf32>
    %129 = math.erf %128 : vector<8x128xf32>
    %cst_59 = arith.constant 1.000000e+00 : f32
    %130 = vector.broadcast %cst_59 : f32 to vector<8x128xf32>
    %131 = arith.addf %130, %129 : vector<8x128xf32>
    %132 = arith.mulf %126, %131 : vector<8x128xf32>
    %133 = arith.addf %132, %82 : vector<8x128xf32>
    %c0_60 = arith.constant 0 : index
    %c0_61 = arith.constant 0 : index
    %c0_62 = arith.constant 0 : index
    %134 = vector.load %arg15[%c0_60, %c0_61, %c0_62] : memref<1x8x128xf32, #tpu.memory_space<vmem>>, vector<1x8x128xf32>
    %135 = vector.shape_cast %134 : vector<1x8x128xf32> to vector<8x128xf32>
    %136 = vector.shape_cast %133 : vector<8x128xf32> to vector<1x8x128xf32>
    tpu.vector_store %arg15[%c0_60, %c0_61, %c0_62], %136 {strides = array<i32>} : memref<1x8x128xf32, #tpu.memory_space<vmem>>, vector<1x8x128xf32>,
    return
  }
  func.func @transform_0(%arg0: i32, %arg1: i32) -> (i32, i32, i32) {
    %c0_i32 = arith.constant 0 : i32
    %c0_i32_0 = arith.constant 0 : i32
    %c0_i32_1 = arith.constant 0 : i32
    return %arg0, %c0_i32, %c0_i32_0 : i32, i32, i32
  }
  func.func @transform_1(%arg0: i32, %arg1: i32) -> (i32, i32) {
    %c0_i32 = arith.constant 0 : i32
    %c0_i32_0 = arith.constant 0 : i32
    %c0_i32_1 = arith.constant 0 : i32
    return %c0_i32, %c0_i32_0 : i32, i32
  }
  func.func @transform_2(%arg0: i32, %arg1: i32) -> (i32, i32) {
    %c0_i32 = arith.constant 0 : i32
    %c0_i32_0 = arith.constant 0 : i32
    %c0_i32_1 = arith.constant 0 : i32
    return %c0_i32, %c0_i32_0 : i32, i32
  }
  func.func @transform_3(%arg0: i32, %arg1: i32) -> (i32, i32) {
    %c0_i32 = arith.constant 0 : i32
    %c0_i32_0 = arith.constant 0 : i32
    %c0_i32_1 = arith.constant 0 : i32
    return %c0_i32, %c0_i32_0 : i32, i32
  }
  func.func @transform_4(%arg0: i32, %arg1: i32) -> (i32, i32) {
    %c0_i32 = arith.constant 0 : i32
    %c0_i32_0 = arith.constant 0 : i32
    %c0_i32_1 = arith.constant 0 : i32
    return %c0_i32, %c0_i32_0 : i32, i32
  }
  func.func @transform_5(%arg0: i32, %arg1: i32) -> (i32, i32) {
    %c0_i32 = arith.constant 0 : i32
    %c0_i32_0 = arith.constant 0 : i32
    %c0_i32_1 = arith.constant 0 : i32
    return %c0_i32, %c0_i32_0 : i32, i32
  }
  func.func @transform_6(%arg0: i32, %arg1: i32) -> (i32, i32) {
    %c0_i32 = arith.constant 0 : i32
    %c0_i32_0 = arith.constant 0 : i32
    %c0_i32_1 = arith.constant 0 : i32
    return %c0_i32, %c0_i32_0 : i32, i32
  }
  func.func @transform_7(%arg0: i32, %arg1: i32) -> (i32, i32) {
    %c0_i32 = arith.constant 0 : i32
    %c0_i32_0 = arith.constant 0 : i32
    %c0_i32_1 = arith.constant 0 : i32
    return %c0_i32, %c0_i32_0 : i32, i32
  }
  func.func @transform_8(%arg0: i32, %arg1: i32) -> (i32, i32) {
    %c0_i32 = arith.constant 0 : i32
    %c0_i32_0 = arith.constant 0 : i32
    %c0_i32_1 = arith.constant 0 : i32
    return %c0_i32, %c0_i32_0 : i32, i32
  }
  func.func @transform_9(%arg0: i32, %arg1: i32) -> (i32, i32) {
    %c0_i32 = arith.constant 0 : i32
    %c0_i32_0 = arith.constant 0 : i32
    %c0_i32_1 = arith.constant 0 : i32
    return %c0_i32, %c0_i32_0 : i32, i32
  }
  func.func @transform_10(%arg0: i32, %arg1: i32) -> (i32, i32) {
    %c0_i32 = arith.constant 0 : i32
    %c0_i32_0 = arith.constant 0 : i32
    %c0_i32_1 = arith.constant 0 : i32
    return %c0_i32, %c0_i32_0 : i32, i32
  }
  func.func @transform_11(%arg0: i32, %arg1: i32) -> (i32, i32) {
    %c0_i32 = arith.constant 0 : i32
    %c0_i32_0 = arith.constant 0 : i32
    %c0_i32_1 = arith.constant 0 : i32
    return %c0_i32, %c0_i32_0 : i32, i32
  }
  func.func @transform_12(%arg0: i32, %arg1: i32) -> (i32, i32) {
    %c0_i32 = arith.constant 0 : i32
    %c0_i32_0 = arith.constant 0 : i32
    %c0_i32_1 = arith.constant 0 : i32
    return %c0_i32, %c0_i32_0 : i32, i32
  }
  func.func @transform_13(%arg0: i32, %arg1: i32) -> (i32, i32, i32) {
    %c0_i32 = arith.constant 0 : i32
    %c0_i32_0 = arith.constant 0 : i32
    return %arg0, %arg1, %c0_i32 : i32, i32, i32
  }
}

</mosaic_0001>

<bundles_post_ra>
// kernel: tpu_custom_call.1
= control target key start
LH: loop header
LB: loop body
LE: loop exit
PB: predicated region body
PF: predicated region fallthrough
CT: control target
= control target key end

     0   :  { %s3926_s0 = inlined_call_operand.hbm [shape: f32[2,16,128], index: 0, kind: input, shape index: {}]   ;;  %s3927_s1 = inlined_call_operand.vmem [shape: f32[1,128], index: 1, kind: input, shape index: {}]   ;;  %s3928_s2 = inlined_call_operand.hbm [shape: f32[1,128], index: 2, kind: input, shape index: {}]   ;;  %s3929_s3 = inlined_call_operand.hbm [shape: f32[128,1536], index: 3, kind: input, shape index: {}]   ;;  %s3930_s4 = inlined_call_operand.hbm [shape: f32[1,1536], index: 4, kind: input, shape index: {}]   ;;  %s3931_s5 = inlined_call_operand.hbm [shape: f32[512,128], index: 5, kind: input, shape index: {}]   ;;  %s3932_s6 = inlined_call_operand.vmem [shape: f32[1,128], index: 6, kind: input, shape index: {}]   ;;  %s3933_s7 = inlined_call_operand.vmem [shape: f32[1,128], index: 7, kind: input, shape index: {}]   ;;  %s3934_s8 = inlined_call_operand.vmem [shape: f32[1,128], index: 8, kind: input, shape index: {}]   ;;  %s3935_s9 = inlined_call_operand.hbm [shape: f32[128,256], index: 9, kind: input, shape index: {}]   ;;  %s3936_s10 = inlined_call_operand.vmem [shape: f32[1,256], index: 10, kind: input, shape index: {}]   ;;  %s3937_s11 = inlined_call_operand.hbm [shape: f32[256,128], index: 11, kind: input, shape index: {}]   ;;  %s3938_s12 = inlined_call_operand.vmem [shape: f32[1,128], index: 12, kind: input, shape index: {}]   ;;  %s3939_s13 = inlined_call_operand.hbm [shape: f32[2,16,128], index: 13, kind: output, shape index: {}]  }
   0x1   :  { %3949 = sst [smem:[#allocation25_spill]] %s3928_s2 }
   0x2   :  { %3950 = sst [smem:[#allocation26_spill]] %s3929_s3 }
   0x3   :  { %3951 = sst [smem:[#allocation27_spill]] %s3930_s4 }
   0x4   :  { %3952 = sst [smem:[#allocation28_spill]] %s3931_s5 }
   0x5   :  { %3953 = sst [smem:[#allocation29_spill]] %s3932_s6 }
   0x6   :  { %3954 = sst [smem:[#allocation30_spill]] %s3933_s7 }
   0x7   :  { %3955 = sst [smem:[#allocation31_spill]] %s3934_s8 }
   0x8   :  { %3956 = sst [smem:[#allocation32_spill]] %s3935_s9 }
   0x9   :  { %3957 = sst [smem:[#allocation33_spill]] %s3936_s10 }
   0xa   :  { %3958 = sst [smem:[#allocation34_spill]] %s3937_s11 }
   0xb   :  { %3959 = sst [smem:[#allocation35_spill]] %s3938_s12 }
   0xc   :  { %3960 = sst [smem:[#allocation36_spill]] %s3939_s13 }
   0xd   :  { %18 = vsyncpa [#allocation4], 0 }
   0xe   :  { %20 = vsyncpa [#allocation4 + $0x1], 0 }
   0xf   :  { %21 = vsyncpa [#allocation7], 0 }
  0x10   :  { %22 = vsyncpa [#allocation10], 0 }
  0x11   :  { %23 = vsyncpa [#allocation13], 0 }
  0x12   :  { %24 = vsyncpa [#allocation5], 0 }
  0x13   :  { %26 = vsyncpa [#allocation5 + $0x1], 0  ;;  %s3467_s25 = smov 0   ;;  %s3469_s26 = smov 0  }
  0x14   :  { %s3471_s27 = smov 0   ;;  %s3473_s28 = smov 0  }
  0x15   :  { %s3475_s29 = smov 0   ;;  %s3477_s30 = smov 0  }
  0x16   :  { %s3479_s14 = smov 0   ;;  %s3481_s15 = smov 0  }
  0x17   :  { %s3483_s16 = smov 0   ;;  %s3485_s17 = smov 0  }
  0x18   :  { %s3487_s18 = smov 0  }
  0x19 LB: > { %3961 = sst [smem:[#allocation21_spill]] %s3366_s15  ;;  %s2635_s19 = sadd.s32 4294967295, %s3378_s18   ;;  %s3378_s18 = sphi %s3487_s18, %s32_s18   ;;  %s3374_s17 = sphi %s3485_s17, %s3997_s17   ;;  %s3370_s16 = sphi %s3483_s16, %s4005_s16   ;;  %s3366_s15 = sphi %s3481_s15, %s3995_s15   ;;  %s3362_s14 = sphi %s3479_s14, %s4004_s14   ;;  %s3358_s30 = sphi %s3477_s30, %s4003_s30   ;;  %s3354_s29 = sphi %s3475_s29, %s4002_s29   ;;  %s3350_s28 = sphi %s3473_s28, %s4001_s28   ;;  %s3346_s27 = sphi %s3471_s27, %s4000_s27   ;;  %s3342_s26 = sphi %s3469_s26, %s3999_s26   ;;  %s3338_s25 = sphi %s3467_s25, %s3998_s25  }
  0x1a   : > { %3962 = sst [smem:[#allocation22_spill]] %s3374_s17  ;;  %p2637_p0 = scmp.ge.s32.totalorder %s3378_s18, 1 }
  0x1b   : > { %p3524_p1 = scmp.eq.s32.totalorder %s2635_s19, 0  ;;  %p3528_p2 = scmp.eq.s32.totalorder %s2635_s19, 3 }
  0x1c   : > { %p355_p3 = scmp.lt.s32.totalorder %s3378_s18, 5  ;;  %s3380_s23 = smov [#allocation6]  }
  0x1d   : > { %s3963_s20 = scalar_select %p3524_p1, 1, 0 }
  0x1e   : > { %s3964_s21 = scalar_select %p3528_p2, 1, 0 }
  0x1f   : > { %p3533_p4 = pnand %p2637_p0, %p355_p3  ;;  %s371_s24 = sshll.u32 %s3380_s23, 4  ;;  %s372_s24 = int_to_ptr.vmem [resolvable:$true] %s371_s24 }
  0x20   : > { %s3381_s13 = smov [#allocation9]   ;;  %s3382_s15 = smov [#allocation12]  }
  0x21   : > { %s3965_s22 = scalar_select %p3533_p4, 1, 0 }
  0x22   : > { %p2890_p5 = pneg %p3533_p4  ;;  %s395_s12 = sshll.u32 %s3381_s13, 4  ;;  %s396_s12 = int_to_ptr.vmem [resolvable:$true] %s395_s12 }
  0x23   : > { %s427_s10 = sshll.u32 %s3382_s15, 4  ;;  %s3073_s23 = scalar_lea.vmem %s372_s24, 16  ;;  %s3545_s10 = int_to_ptr.vmem [resolvable:$true] %s427_s10 }
  0x24   : > { %p3541_p6 = pnand %p2890_p5, %p3524_p1  ;;  %p3074_p8 = scmp.ne.s32.totalorder %s372_s24, %s3073_s23 }
  0x25   : > { %s3080_s13 = scalar_lea.vmem %s372_s24, 32  ;;  %p3081_p11 = scmp.lt.s32.totalorder %s372_s24, %s372_s24 }
  0x26   : > { %p3549_p7 = pneg %p3541_p6  ;;  %p3082_p12 = scmp.lt.s32.totalorder %s3080_s13, %s3073_s23 }
  0x28   : > { %p3076_p9 = pnand %p3074_p8, %p3549_p7  ;;  %p3083_p13 = por %p3082_p12, %p3081_p11 }
  0x2a   : > { %p3077_p10 = pneg %p3076_p9 }
  0x2c   : > { %p3084_p0 = pnand %p3083_p13, %p3077_p10 }
  0x2e   : > { %3087 = shalt.err (!%p3084_p0)
}
  0x2f   : > { %s3968_s2 = sld [smem:[#allocation25_spill]]  ;;  %s3099_s6 = scalar_lea.vmem %s396_s12, 192 }
  0x30   : > { %p3100_p3 = scmp.ne.s32.totalorder %s396_s12, %s3099_s6  ;;  %p3107_p8 = scmp.lt.s32.totalorder %s396_s12, %s396_s12 }
  0x31   : > { %p3108_p9 = scmp.lt.s32.totalorder %s3099_s6, %s3099_s6 }
  0x32   : > { %p3102_p5 = pnand %p3100_p3, %p3549_p7 }
  0x33   : > { %p3109_p2 = por %p3108_p9, %p3107_p8 }
  0x34   : > { %p3103_p4 = pneg %p3102_p5 }
  0x35   : > { %2893 = dma.hbm_to_vmem [thread:$0]  (!%p3541_p6), %s3968_s2, 16, %s372_s24, [#allocation7]  }
  0x36   : > { %p3110_p1 = pnand %p3109_p2, %p3103_p4 }
  0x38   : > { %3113 = shalt.err (!%p3110_p1)
}
  0x39   : > { %s3969_s4 = sld [smem:[#allocation27_spill]]  ;;  %s3125_s7 = scalar_lea.vmem %s3545_s10, 4096 }
  0x3a   : > { %p3126_p10 = scmp.ne.s32.totalorder %s3545_s10, %s3125_s7  ;;  %p3133_p13 = scmp.lt.s32.totalorder %s3545_s10, %s3545_s10 }
  0x3b   : > { %p3134_p0 = scmp.lt.s32.totalorder %s3125_s7, %s3125_s7 }
  0x3c   : > { %p3128_p11 = pnand %p3126_p10, %p3549_p7 }
  0x3d   : > { %p3135_p2 = por %p3134_p0, %p3133_p13 }
  0x3e   : > { %p3129_p12 = pneg %p3128_p11 }
  0x3f   : > { %2899 = dma.hbm_to_vmem [thread:$0]  (!%p3541_p6), %s3969_s4, 192, %s396_s12, [#allocation10]  }
  0x40   : > { %p3136_p1 = pnand %p3135_p2, %p3129_p12 }
  0x42   : > { %3139 = shalt.err (!%p3136_p1)
}
  0x43   : > { %s3383_s6 = smov 256   ;;  %s3384_s24 = smov 16  }
  0x44   : > { %s3970_s9 = sld [smem:[#allocation32_spill]]  ;;  %s3385_s12 = smov [#allocation8]  }
  0x45   : > { %s381_s13 = sshll.u32 %s3385_s12, 4  ;;  %s382_s13 = int_to_ptr.vmem [resolvable:$true] %s381_s13 }
  0x46   : > { %s3151_s2 = scalar_lea.vmem %s382_s13, 24576  ;;  %p3159_p8 = scmp.lt.s32.totalorder %s382_s13, %s382_s13 }
  0x47   : > { %p3152_p4 = scmp.ne.s32.totalorder %s382_s13, %s3151_s2  ;;  %p3160_p9 = scmp.lt.s32.totalorder %s3151_s2, %s3151_s2 }
  0x49   : > { %p3154_p3 = pnand %p3152_p4, %p3549_p7  ;;  %p3161_p10 = por %p3160_p9, %p3159_p8 }
  0x4a   : > { %2905 = dma.hbm_to_vmem [thread:$0]  (!%p3541_p6), %s3970_s9, 4096, %s3545_s10, [#allocation13], %s3383_s6, %s3383_s6, %s3384_s24  }
  0x4b   : > { %p3155_p5 = pneg %p3154_p3 }
  0x4d   : > { %p3162_p11 = pnand %p3161_p10, %p3155_p5 }
  0x4f   : > { %3165 = shalt.err (!%p3162_p11)
}
  0x50   : > { %s3386_s7 = smov 1536   ;;  %s3387_s4 = smov 96  }
  0x51   : > { %s3971_s3 = sld [smem:[#allocation26_spill]]  ;;  %s3388_s6 = smov [#allocation11]  }
  0x52   : > { %s405_s24 = sshll.u32 %s3388_s6, 4  ;;  %s406_s24 = int_to_ptr.vmem [resolvable:$true] %s405_s24 }
  0x53   : > { %s3177_s23 = scalar_lea.vmem %s406_s24, 8192  ;;  %p3185_p2 = scmp.lt.s32.totalorder %s406_s24, %s406_s24 }
  0x54   : > { %p3178_p12 = scmp.ne.s32.totalorder %s406_s24, %s3177_s23  ;;  %p3186_p1 = scmp.lt.s32.totalorder %s3177_s23, %s3177_s23 }
  0x56   : > { %p3180_p13 = pnand %p3178_p12, %p3549_p7  ;;  %p3187_p4 = por %p3186_p1, %p3185_p2 }
  0x57   : > { %2896 = dma.hbm_to_vmem [thread:$0]  (!%p3541_p6), %s3971_s3, 24576, %s382_s13, [#allocation7], %s3386_s7, %s3386_s7, %s3387_s4  }
  0x58   : > { %p3181_p0 = pneg %p3180_p13 }
  0x5a   : > { %p3188_p3 = pnand %p3187_p4, %p3181_p0 }
  0x5c   : > { %3191 = shalt.err (!%p3188_p3)
}
  0x5d   : > { %s3944_s2 = smov 128   ;;  %s3945_s12 = smov 8  }
  0x5e   : > { %s3972_s5 = sld [smem:[#allocation28_spill]]  ;;  %s3391_s7 = smov [#allocation14]  }
  0x5f   : > { %s443_s15 = sshll.u32 %s3391_s7, 4  ;;  %s444_s15 = int_to_ptr.vmem [resolvable:$true] %s443_s15 }
  0x60   : > { %s3203_s10 = scalar_lea.vmem %s444_s15, 4096  ;;  %p3211_p10 = scmp.lt.s32.totalorder %s444_s15, %s444_s15 }
  0x61   : > { %p3204_p5 = scmp.ne.s32.totalorder %s444_s15, %s3203_s10  ;;  %p3212_p11 = scmp.lt.s32.totalorder %s3203_s10, %s3203_s10 }
  0x63   : > { %p3206_p8 = pnand %p3204_p5, %p3549_p7  ;;  %p3213_p12 = por %p3212_p11, %p3211_p10 }
  0x64   : > { %2902 = dma.hbm_to_vmem [thread:$0]  (!%p3541_p6), %s3972_s5, 8192, %s406_s24, [#allocation10], %s3944_s2, %s3944_s2, %s3945_s12  }
  0x65   : > { %p3207_p9 = pneg %p3206_p8 }
  0x67   : > { %p3214_p13 = pnand %p3213_p12, %p3207_p9 }
  0x69   : > { %3217 = shalt.err (!%p3214_p13)
}
  0x6a   : > { %s3973_s11 = sld [smem:[#allocation34_spill]]  ;;  %s2636_s8 = sadd.s32 4294967294, %s3378_s18  }
  0x6b   : > { %s41_s19 = sadd.s32 1, %s3370_s16  ;;  %s44_s23 = sadd.s32 1, %s3374_s17 }
  0x6c   : > { %p42_p7 = scmp.ge.s32.totalorder %s41_s19, 2  ;;  %s51_s4 = sadd.s32 1, %s3358_s30 }
  0x6d   : > { %p58_p0 = scmp.ne.s32.totalorder %s3358_s30, %s3354_s29  ;;  %p59_p2 = scmp.eq.s32.totalorder %s3378_s18, 0 }
  0x6e   : > { %s4007_s19 = smov (%p42_p7, %s41_s19), 0  ;;  %s4009_s23 = smov (!%p42_p7, %s44_s23), %s3374_s17 }
  0x6f   : > { %3974 = sst [smem:[#allocation23_spill]] %s4007_s19  ;;  %p3616_p1 = por %p59_p2, %p58_p0 }
  0x70   : > { %2908 = dma.hbm_to_vmem [thread:$0]  (!%p3541_p6), %s3973_s11, 4096, %s444_s15, [#allocation13], %s3944_s2, %s3944_s2, %s3945_s12  }
  0x71   : > { %p64_p6 = scmp.ne.s32.totalorder %s3354_s29, %s3350_s28  ;;  %p46_p4 = scmp.ge.s32.totalorder %s4009_s23, 2 }
  0x72   : > { %s327_s7 = ssub.s32 %s3370_s16, %s4007_s19  ;;  %p3976_p3 = scmp.ne.s32.totalorder %s3963_s20, 0 }
  0x73   : > { %s331_s10 = sadd.s32 1, %s3346_s27  ;;  %s4011_s23 = smov (%p46_p4, %s4009_s23), 0 }
  0x74   : > { %p3626_p5 = por %p3976_p3, %p64_p6  ;;  %3978 = sst [smem:[#allocation24_spill]] %s4011_s23 }
  0x75   : > { %p341_p8 = scmp.ne.s32.totalorder %s3346_s27, %s3342_s26  ;;  %p347_p9 = scmp.ne.s32.totalorder %s3342_s26, %s3338_s25 }
  0x76   : > { %s48_s6 = ssub.s32 %s3374_s17, %s4011_s23  ;;  %p348_p10 = scmp.eq.s32.totalorder %s2636_s8, 3 }
  0x77   : > { %p49_p11 = scmp.eq.s32.totalorder %s48_s6, 0  ;;  %s328_s28 = sor.u32 %s327_s7, %s48_s6 }
  0x78   : > { %p329_p12 = scmp.eq.s32.totalorder %s328_s28, 0  ;;  %p3979_p13 = scmp.ne.s32.totalorder %s3964_s21, 0 }
  0x79   : > { %s3646_s2 = scalar_select %p49_p11, %s3358_s30, %s51_s4  }
  0x7a   : > { %p3641_p7 = por %p3979_p13, %p341_p8  ;;  %p3651_p0 = por %p348_p10, %p347_p9 }
  0x7b   : > { %s3649_s12 = scalar_select %p329_p12, %s3346_s27, %s331_s10  }
  0x7c   : > { %p2923_p2 = scmp.lt.s32.totalorder %s3378_s18, 4  ;;  %s460_s5 = sand.u32 1, %s3358_s30  }
  0x7d   : > { %s2675_s9 = sshll.u32 %s3374_s17, 8  ;;  %s2645_s8 = sshll.u32 %s460_s5, 4 }
  0x7e   : > { %s470_s21 = scalar_lea.hbm %s3926_s0, %s2675_s9  ;;  %s464_s6 = scalar_lea.vmem [#allocation3], %s2645_s8 }
  0x7f   : > { %s471_s28 = sshll.u32 %s464_s6, 4  ;;  %p3663_p6 = pnand %p2923_p2, %p3616_p1  ;;  %s472_s28 = int_to_ptr.vmem [resolvable:$true] %s471_s28 }
  0x80   : > { %s461_s10 = scalar_lea.sflag [#allocation4], %s460_s5  ;;  %s3231_s23 = scalar_lea.vmem %s472_s28, 256 }
  0x81   : > { %p3220_p4 = pneg %p3663_p6  ;;  %p3232_p3 = scmp.ne.s32.totalorder %s472_s28, %s3231_s23 }
  0x82   : > { %s3392_s19 = smov [#allocation3]  }
  0x83   : > { %p3234_p8 = pnand %p3232_p3, %p3220_p4  ;;  %s3236_s17 = sshll.u32 %s3392_s19, 4  ;;  %s3237_s17 = int_to_ptr.vmem [resolvable:$false] %s3236_s17 }
  0x84   : > { %s3238_s9 = scalar_lea.vmem %s3237_s17, 512  ;;  %p3239_p10 = scmp.lt.s32.totalorder %s472_s28, %s3237_s17 }
  0x85   : > { %p3235_p9 = pneg %p3234_p8  ;;  %p3240_p11 = scmp.lt.s32.totalorder %s3238_s9, %s3231_s23 }
  0x87   : > { %p3241_p12 = por %p3240_p11, %p3239_p10 }
  0x89   : > { %p3242_p1 = pnand %p3241_p12, %p3235_p9 }
  0x8b   : > { %3245 = shalt.err (!%p3242_p1)
}
  0x8c   : > { %s3983_s11 = smov 8   ;;  %s3984_s13 = smov 128  }
  0x8d   : > { %2912 = dma.hbm_to_vmem [thread:$0]  (!%p3663_p6), %s470_s21, 256, %s472_s28, %s461_s10, %s3984_s13, %s3984_s13, %s3983_s11  }
  0x8e   : > { %p3985_p13 = scmp.ne.s32.totalorder %s3965_s22, 0 }
  0x8f   : > { %s485_s5 = sand.u32 (!%p3985_p13), 1, %s3354_s29  }
  0x90   : > { %483 = sbr.rel (%p3985_p13) target bundleno = 3958 (0xf76), region = 72  ;;  %s2649_s19 = sshll.u32 (!%p3985_p13), %s485_s5, 4 }
  0x91   : > { %s486_s8 = scalar_lea.sflag (!%p3985_p13), [#allocation4], %s485_s5  ;;  %s3677_s7 = scalar_lea.vmem (!%p3985_p13), [#allocation3], %s2649_s19 }
  0x95   : > { %3317 = dma.done.wait (%p3626_p5), %s486_s8, 256  }
  0x96   : > { %3319 = vsyncadd (%p3626_p5), %s486_s8, 4294967040  ;;  %p3986_p2 = scmp.ne.s32.totalorder %s3963_s20, 0 }
  0x98   : > { %3321 = dma.done.wait (%p3986_p2), [#allocation7], 24592  }
  0x99   : > { %3323 = vsyncadd (%p3986_p2), [#allocation7], 4294942704 }
  0x9a   : > { %3325 = dma.done.wait (%p3986_p2), [#allocation10], 8384  }
  0x9b   : > { %3327 = vsyncadd (%p3986_p2), [#allocation10], 4294958912 }
  0x9c   : > { %3329 = dma.done.wait (%p3986_p2), [#allocation13], 8192  }
  0x9d   : > { %3331 = vsyncadd (%p3986_p2), [#allocation13], 4294959104  ;;  %s553_s17 = sand.u32 1, %s3342_s26   ;;  %p2657_p5 = scmp.ne.s32.totalorder %s3362_s14, 0 }
  0x9e   : > { %s3698_s22 = sshll.u32 %s553_s17, 3 }
  0x9f   : > { %s555_s23 = scalar_lea.vmem [#allocation15], %s3698_s22  ;;  %559 = sbr.rel (%p2657_p5) target bundleno = 744 (0x2e8), region = 104 }
  0xa4   : > { %v560_v0 = vld [vmem:[%s3677_s7] sm:$0xff]  ;;  %v561_v1 = vld [vmem:[%s3677_s7 + $0x8] sm:$0xff] }
  0xa5   : > { %564 = vadd.xlane.f32.xlu0 %v560_v0  ;;  %v784_v2 = vld [vmem:[#allocation8 + $0x5a8] sm:$0xff]  ;;  %v786_v3 = vld [vmem:[#allocation8 + $0x5b8] sm:$0xff]  ;;  %v783_v4 = vld [vmem:[#allocation8 + $0x5a0] sm:$0xff] }
  0xa6   : > { %859 = vmatprep.subr.mxu0 %v784_v2  ;;  %936 = vmatprep.subr.mxu1 %v786_v3  ;;  %v785_v5 = vld [vmem:[#allocation8 + $0x5b0] sm:$0xff]  ;;  %v772_v6 = vld [vmem:[#allocation8 + $0x548] sm:$0xff]  ;;  %v774_v7 = vld [vmem:[#allocation8 + $0x558] sm:$0xff] }
  0xa7   : > { %860 = vmatpush1.msra.mxu0 %v783_v4  ;;  %937 = vmatpush1.msra.mxu1 %v785_v5  ;;  %v771_v8 = vld [vmem:[#allocation8 + $0x540] sm:$0xff]  ;;  %v773_v9 = vld [vmem:[#allocation8 + $0x550] sm:$0xff]  ;;  %v760_v10 = vld [vmem:[#allocation8 + $0x4e8] sm:$0xff] }
  0xa8   : > { %861 = vmatprep.subr.mxu0 %v772_v6  ;;  %938 = vmatprep.subr.mxu1 %v774_v7  ;;  %v762_v11 = vld [vmem:[#allocation8 + $0x4f8] sm:$0xff]  ;;  %v759_v12 = vld [vmem:[#allocation8 + $0x4e0] sm:$0xff]  ;;  %v761_v13 = vld [vmem:[#allocation8 + $0x4f0] sm:$0xff] }
  0xa9   : > { %566 = vadd.xlane.f32.xlu0 %v561_v1  ;;  %862 = vmatpush1.msra.mxu0 %v771_v8  ;;  %v748_v14 = vld [vmem:[#allocation8 + $0x488] sm:$0xff]  ;;  %v750_v15 = vld [vmem:[#allocation8 + $0x498] sm:$0xff]  ;;  %v747_v16 = vld [vmem:[#allocation8 + $0x480] sm:$0xff] }
  0xaa   : > { %939 = vmatpush1.msra.mxu1 %v773_v9  ;;  %863 = vmatprep.subr.mxu0 %v760_v10  ;;  %v749_v17 = vld [vmem:[#allocation8 + $0x490] sm:$0xff]  ;;  %v736_v18 = vld [vmem:[#allocation8 + $0x428] sm:$0xff]  ;;  %v738_v19 = vld [vmem:[#allocation8 + $0x438] sm:$0xff] }
  0xab   : > { %940 = vmatprep.subr.mxu1 %v762_v11  ;;  %864 = vmatpush1.msra.mxu0 %v759_v12  ;;  %v735_v28 = vld [vmem:[#allocation8 + $0x420] sm:$0xff]  ;;  %v737_v29 = vld [vmem:[#allocation8 + $0x430] sm:$0xff]  ;;  %v724_v30 = vld [vmem:[#allocation8 + $0x3c8] sm:$0xff]  ;;  %v3393_v12 = vmov 0.0  }
  0xac   : > { %941 = vmatpush1.msra.mxu1 %v761_v13  ;;  %865 = vmatprep.subr.mxu0 %v748_v14  ;;  %v726_v31 = vld [vmem:[#allocation8 + $0x3d8] sm:$0xff]  ;;  %v723_v32 = vld [vmem:[#allocation8 + $0x3c0] sm:$0xff]  ;;  %v725_v33 = vld [vmem:[#allocation8 + $0x3d0] sm:$0xff] }
  0xad   : > { %942 = vmatprep.subr.mxu1 %v750_v15  ;;  %866 = vmatpush1.msra.mxu0 %v747_v16  ;;  %v712_v34 = vld [vmem:[#allocation8 + $0x368] sm:$0xff]  ;;  %v714_v35 = vld [vmem:[#allocation8 + $0x378] sm:$0xff]  ;;  %v711_v36 = vld [vmem:[#allocation8 + $0x360] sm:$0xff] }
  0xae   : > { %943 = vmatpush1.msra.mxu1 %v749_v17  ;;  %867 = vmatprep.subr.mxu0 %v736_v18  ;;  %v713_v37 = vld [vmem:[#allocation8 + $0x370] sm:$0xff]  ;;  %v700_v38 = vld [vmem:[#allocation8 + $0x308] sm:$0xff]  ;;  %v702_v39 = vld [vmem:[#allocation8 + $0x318] sm:$0xff] }
  0xaf   : > { %944 = vmatprep.subr.mxu1 %v738_v19  ;;  %868 = vmatpush1.msra.mxu0 %v735_v28  ;;  %v699_v40 = vld [vmem:[#allocation8 + $0x300] sm:$0xff]  ;;  %v701_v41 = vld [vmem:[#allocation8 + $0x310] sm:$0xff]  ;;  %v688_v42 = vld [vmem:[#allocation8 + $0x2a8] sm:$0xff] }
  0xb0   : > { %945 = vmatpush1.msra.mxu1 %v737_v29  ;;  %869 = vmatprep.subr.mxu0 %v724_v30  ;;  %v690_v43 = vld [vmem:[#allocation8 + $0x2b8] sm:$0xff]  ;;  %v687_v44 = vld [vmem:[#allocation8 + $0x2a0] sm:$0xff]  ;;  %v689_v45 = vld [vmem:[#allocation8 + $0x2b0] sm:$0xff] }
  0xb1   : > { %946 = vmatprep.subr.mxu1 %v726_v31  ;;  %870 = vmatpush1.msra.mxu0 %v723_v32  ;;  %v676_v46 = vld [vmem:[#allocation8 + $0x248] sm:$0xff]  ;;  %v678_v47 = vld [vmem:[#allocation8 + $0x258] sm:$0xff]  ;;  %v675_v48 = vld [vmem:[#allocation8 + $0x240] sm:$0xff] }
  0xb2   : > { %947 = vmatpush1.msra.mxu1 %v725_v33  ;;  %871 = vmatprep.subr.mxu0 %v712_v34  ;;  %v677_v49 = vld [vmem:[#allocation8 + $0x250] sm:$0xff]  ;;  %v664_v50 = vld [vmem:[#allocation8 + $0x1e8] sm:$0xff]  ;;  %v666_v51 = vld [vmem:[#allocation8 + $0x1f8] sm:$0xff] }
  0xb3   : > { %948 = vmatprep.subr.mxu1 %v714_v35  ;;  %872 = vmatpush1.msra.mxu0 %v711_v36  ;;  %v663_v52 = vld [vmem:[#allocation8 + $0x1e0] sm:$0xff]  ;;  %v665_v53 = vld [vmem:[#allocation8 + $0x1f0] sm:$0xff]  ;;  %v652_v54 = vld [vmem:[#allocation8 + $0x188] sm:$0xff] }
  0xb4   : > { %949 = vmatpush1.msra.mxu1 %v713_v37  ;;  %873 = vmatprep.subr.mxu0 %v700_v38  ;;  %v654_v55 = vld [vmem:[#allocation8 + $0x198] sm:$0xff]  ;;  %v651_v56 = vld [vmem:[#allocation8 + $0x180] sm:$0xff]  ;;  %v653_v57 = vld [vmem:[#allocation8 + $0x190] sm:$0xff] }
  0xb5   : > { %950 = vmatprep.subr.mxu1 %v702_v39  ;;  %874 = vmatpush1.msra.mxu0 %v699_v40  ;;  %v640_v58 = vld [vmem:[#allocation8 + $0x128] sm:$0xff]  ;;  %v642_v59 = vld [vmem:[#allocation8 + $0x138] sm:$0xff]  ;;  %v639_v60 = vld [vmem:[#allocation8 + $0x120] sm:$0xff] }
  0xb6   : > { %951 = vmatpush1.msra.mxu1 %v701_v41  ;;  %875 = vmatprep.subr.mxu0 %v688_v42  ;;  %v641_v61 = vld [vmem:[#allocation8 + $0x130] sm:$0xff]  ;;  %v628_v62 = vld [vmem:[#allocation8 + $0xc8] sm:$0xff]  ;;  %v630_v63 = vld [vmem:[#allocation8 + $0xd8] sm:$0xff] }
  0xb7   : > { %952 = vmatprep.subr.mxu1 %v690_v43  ;;  %876 = vmatpush1.msra.mxu0 %v687_v44  ;;  %v616_v2 = vld [vmem:[#allocation8 + $0x68] sm:$0xff]  ;;  %v618_v3 = vld [vmem:[#allocation8 + $0x78] sm:$0xff]  ;;  %v615_v4 = vld [vmem:[#allocation8 + $0x60] sm:$0xff] }
  0xb8   : > { %953 = vmatpush1.msra.mxu1 %v689_v45  ;;  %877 = vmatprep.subr.mxu0 %v676_v46  ;;  %v617_v5 = vld [vmem:[#allocation8 + $0x70] sm:$0xff]  ;;  %v604_v6 = vld [vmem:[#allocation8 + $0x8] sm:$0xff]  ;;  %v606_v7 = vld [vmem:[#allocation8 + $0x18] sm:$0xff] }
  0xb9   : > { %954 = vmatprep.subr.mxu1 %v678_v47  ;;  %878 = vmatpush1.msra.mxu0 %v675_v48  ;;  %v603_v8 = vld [vmem:[#allocation8] sm:$0xff]  ;;  %v605_v9 = vld [vmem:[#allocation8 + $0x10] sm:$0xff]  ;;  %v788_v10 = vld [vmem:[#allocation8 + $0x5c8] sm:$0xff] }
  0xba   : > { %955 = vmatpush1.msra.mxu1 %v677_v49  ;;  %879 = vmatprep.subr.mxu0 %v664_v50  ;;  %v790_v11 = vld [vmem:[#allocation8 + $0x5d8] sm:$0xff]  ;;  %v787_v29 = vld [vmem:[#allocation8 + $0x5c0] sm:$0xff]  ;;  %v789_v30 = vld [vmem:[#allocation8 + $0x5d0] sm:$0xff] }
  0xbb   : > { %956 = vmatprep.subr.mxu1 %v666_v51  ;;  %880 = vmatpush1.msra.mxu0 %v663_v52  ;;  %v776_v31 = vld [vmem:[#allocation8 + $0x568] sm:$0xff]  ;;  %v778_v32 = vld [vmem:[#allocation8 + $0x578] sm:$0xff]  ;;  %v775_v34 = vld [vmem:[#allocation8 + $0x560] sm:$0xff] }
  0xbc   : > { %957 = vmatpush1.msra.mxu1 %v665_v53  ;;  %881 = vmatprep.subr.mxu0 %v652_v54  ;;  %v777_v35 = vld [vmem:[#allocation8 + $0x570] sm:$0xff]  ;;  %v766_v36 = vld [vmem:[#allocation8 + $0x518] sm:$0xff]  ;;  %v763_v37 = vld [vmem:[#allocation8 + $0x500] sm:$0xff] }
  0xbd   : > { %958 = vmatprep.subr.mxu1 %v654_v55  ;;  %882 = vmatpush1.msra.mxu0 %v651_v56  ;;  %v765_v38 = vld [vmem:[#allocation8 + $0x510] sm:$0xff]  ;;  %v752_v39 = vld [vmem:[#allocation8 + $0x4a8] sm:$0xff]  ;;  %v754_v40 = vld [vmem:[#allocation8 + $0x4b8] sm:$0xff] }
  0xbe   : > { %959 = vmatpush1.msra.mxu1 %v653_v57  ;;  %883 = vmatprep.subr.mxu0 %v640_v58  ;;  %v751_v41 = vld [vmem:[#allocation8 + $0x4a0] sm:$0xff]  ;;  %v753_v42 = vld [vmem:[#allocation8 + $0x4b0] sm:$0xff]  ;;  %v740_v43 = vld [vmem:[#allocation8 + $0x448] sm:$0xff] }
  0xbf   : > { %960 = vmatprep.subr.mxu1 %v642_v59  ;;  %884 = vmatpush1.msra.mxu0 %v639_v60  ;;  %v742_v44 = vld [vmem:[#allocation8 + $0x458] sm:$0xff]  ;;  %v739_v45 = vld [vmem:[#allocation8 + $0x440] sm:$0xff]  ;;  %v741_v46 = vld [vmem:[#allocation8 + $0x450] sm:$0xff] }
  0xc0   : > { %961 = vmatpush1.msra.mxu1 %v641_v61  ;;  %885 = vmatprep.subr.mxu0 %v628_v62  ;;  %v728_v47 = vld [vmem:[#allocation8 + $0x3e8] sm:$0xff]  ;;  %v730_v48 = vld [vmem:[#allocation8 + $0x3f8] sm:$0xff]  ;;  %v727_v49 = vld [vmem:[#allocation8 + $0x3e0] sm:$0xff] }
  0xc1   : > { %962 = vmatprep.subr.mxu1 %v630_v63  ;;  %923 = vmatprep.mubr.f32.mxu0 %v3393_v12  ;;  %v729_v50 = vld [vmem:[#allocation8 + $0x3f0] sm:$0xff]  ;;  %v716_v51 = vld [vmem:[#allocation8 + $0x388] sm:$0xff]  ;;  %v718_v52 = vld [vmem:[#allocation8 + $0x398] sm:$0xff] }
  0xc2   : > { %1000 = vmatprep.mubr.f32.mxu1 %v3393_v12  ;;  %v715_v53 = vld [vmem:[#allocation8 + $0x380] sm:$0xff]  ;;  %v717_v54 = vld [vmem:[#allocation8 + $0x390] sm:$0xff]  ;;  %v704_v55 = vld [vmem:[#allocation8 + $0x328] sm:$0xff] }
  0xc3   : > { %v706_v56 = vld [vmem:[#allocation8 + $0x338] sm:$0xff]  ;;  %v703_v57 = vld [vmem:[#allocation8 + $0x320] sm:$0xff]  ;;  %v705_v58 = vld [vmem:[#allocation8 + $0x330] sm:$0xff] }
  0xc4   : > { %v692_v59 = vld [vmem:[#allocation8 + $0x2c8] sm:$0xff]  ;;  %v694_v60 = vld [vmem:[#allocation8 + $0x2d8] sm:$0xff]  ;;  %v691_v61 = vld [vmem:[#allocation8 + $0x2c0] sm:$0xff] }
  0xc5   : > { %v693_v62 = vld [vmem:[#allocation8 + $0x2d0] sm:$0xff]  ;;  %v680_v63 = vld [vmem:[#allocation8 + $0x268] sm:$0xff] }
 0x12e   : > { %v565_v20 = vpop.xlane.xlu0 %564 }
 0x12f   : > { %v569_v21 = vmul.f32 0.0078125, %v565_v20  ;;  %v2658_v20 = vld [vmem:[%s3927_s1] ss:$0 sm:$0xff] }
 0x131   : > { %v3704_v22 = vsub.f32 %v560_v0, %v569_v21  ;;  %v627_v0 = vld [vmem:[#allocation8 + $0xc0] sm:$0xff] }
 0x132   : > { %v567_v23 = vpop.xlane.xlu0 %566  ;;  %886 = vmatpush1.msra.mxu0 %v627_v0  ;;  %v682_v0 = vld [vmem:[#allocation8 + $0x278] sm:$0xff] }
 0x133   : > { %v570_v24 = vmul.f32 0.0078125, %v567_v23  ;;  %v573_v25 = vmul.f32 %v3704_v22, %v3704_v22  ;;  %887 = vmatprep.subr.mxu0 %v616_v2  ;;  %v2659_v23 = vld [vmem:[#allocation6] ss:$0 sm:$0xff]  ;;  %v681_v2 = vld [vmem:[#allocation8 + $0x270] sm:$0xff] }
 0x134   : > { %888 = vmatpush1.msra.mxu0 %v615_v4  ;;  %v670_v4 = vld [vmem:[#allocation8 + $0x218] sm:$0xff] }
 0x135   : > { %v3708_v26 = vsub.f32 %v561_v1, %v570_v24  ;;  %575 = vadd.xlane.f32.xlu1 %v573_v25  ;;  %v629_v1 = vld [vmem:[#allocation8 + $0xd0] sm:$0xff]  ;;  %889 = vmatprep.subr.mxu0 %v604_v6 }
 0x136   : > { %963 = vmatpush1.msra.mxu1 %v629_v1  ;;  %890 = vmatpush1.msra.mxu0 %v603_v8  ;;  %v679_v1 = vld [vmem:[#allocation8 + $0x260] sm:$0xff]  ;;  %v669_v6 = vld [vmem:[#allocation8 + $0x210] sm:$0xff]  ;;  %v658_v8 = vld [vmem:[#allocation8 + $0x1b8] sm:$0xff] }
 0x137   : > { %v574_v27 = vmul.f32 %v3708_v26, %v3708_v26  ;;  %964 = vmatprep.subr.mxu1 %v618_v3  ;;  %1013 = vmatprep.subr.mxu0 %v788_v10  ;;  %v668_v3 = vld [vmem:[#allocation8 + $0x208] sm:$0xff]  ;;  %v657_v10 = vld [vmem:[#allocation8 + $0x1b0] sm:$0xff] }
 0x138   : > { %965 = vmatpush1.msra.mxu1 %v617_v5  ;;  %v667_v5 = vld [vmem:[#allocation8 + $0x200] sm:$0xff] }
 0x139   : > { %577 = vadd.xlane.f32.xlu1 %v574_v27  ;;  %966 = vmatprep.subr.mxu1 %v606_v7  ;;  %v656_v7 = vld [vmem:[#allocation8 + $0x1a8] sm:$0xff] }
 0x13a   : > { %967 = vmatpush1.msra.mxu1 %v605_v9  ;;  %v655_v9 = vld [vmem:[#allocation8 + $0x1a0] sm:$0xff] }
 0x13b   : > { %1090 = vmatprep.subr.mxu1 %v790_v11  ;;  %v644_v11 = vld [vmem:[#allocation8 + $0x148] sm:$0xff] }
 0x1be   : > { %v576_v13 = vpop.xlane.xlu1 %575 }
 0x1bf   : > { %v579_v14 = vmul.f32 0.0078125, %v576_v13  ;;  %v646_v13 = vld [vmem:[#allocation8 + $0x158] sm:$0xff] }
 0x1c1   : > { %v581_v15 = vadd.f32 1e-05, %v579_v14  ;;  %v643_v14 = vld [vmem:[#allocation8 + $0x140] sm:$0xff] }
 0x1c2   : > { %v578_v16 = vpop.xlane.xlu1 %577 }
 0x1c3   : > { %3034 = vrsqrt.f32 %v581_v15  ;;  %v580_v17 = vmul.f32 0.0078125, %v578_v16  ;;  %v645_v15 = vld [vmem:[#allocation8 + $0x150] sm:$0xff]  ;;  %v632_v16 = vld [vmem:[#allocation8 + $0xe8] sm:$0xff] }
 0x1c5   : > { %v582_v18 = vadd.f32 1e-05, %v580_v17  ;;  %v634_v17 = vld [vmem:[#allocation8 + $0xf8] sm:$0xff] }
 0x1c7   : > { %3036 = vrsqrt.f32 %v582_v18  ;;  %v631_v18 = vld [vmem:[#allocation8 + $0xe0] sm:$0xff] }
 0x1d0   : > { %v3035_v19 = vpop.eup %3034 }
 0x1d1   : > { %v585_v21 = vmul.f32 %v3035_v19, %v3704_v22  ;;  %v764_v22 = vld [vmem:[#allocation8 + $0x508] sm:$0xff]  ;;  %v633_v19 = vld [vmem:[#allocation8 + $0xf0] sm:$0xff] }
 0x1d3   : > { %v593_v24 = vmul.f32 %v2658_v20, %v585_v21  ;;  %v622_v21 = vld [vmem:[#allocation8 + $0x98] sm:$0xff] }
 0x1d4   : > { %v3037_v25 = vpop.eup %3036 }
 0x1d5   : > { %v586_v27 = vmul.f32 %v3037_v25, %v3708_v26  ;;  %v3719_v28 = vadd.f32 %v2659_v23, %v593_v24  ;;  %v621_v24 = vld [vmem:[#allocation8 + $0x90] sm:$0xff]  ;;  %v608_v25 = vld [vmem:[#allocation8 + $0x28] sm:$0xff] }
 0x1d7   : > { %v594_v33 = vmul.f32 %v2658_v20, %v586_v27  ;;  %924 = vmatmul.mubr.f32.vlgmr.msra.gmra.mxu0 %v3719_v28  ;;  %1001 = vmatmul.mubr.f32.vlgmr.msra.gmra.mxu1 %v3719_v28  ;;  %v620_v20 = vld [vmem:[#allocation8 + $0x88] sm:$0xff]  ;;  %v610_v27 = vld [vmem:[#allocation8 + $0x38] sm:$0xff] }
 0x1d8   : > { %1014 = vmatpush1.msra.mxu0 %v787_v29  ;;  %1091 = vmatpush1.msra.mxu1 %v789_v30  ;;  %v607_v29 = vld [vmem:[#allocation8 + $0x20] sm:$0xff]  ;;  %v609_v30 = vld [vmem:[#allocation8 + $0x30] sm:$0xff] }
 0x1d9   : > { %1015 = vmatprep.subr.mxu0 %v776_v31  ;;  %1092 = vmatprep.subr.mxu1 %v778_v32  ;;  %v3723_v26 = vadd.f32 %v2659_v23, %v594_v33  ;;  %v619_v23 = vld [vmem:[#allocation8 + $0x80] sm:$0xff]  ;;  %v792_v31 = vld [vmem:[#allocation8 + $0x5e8] sm:$0xff]  ;;  %v794_v32 = vld [vmem:[#allocation8 + $0x5f8] sm:$0xff] }
 0x1da   : > { %1016 = vmatpush1.msra.mxu0 %v775_v34  ;;  %1093 = vmatpush1.msra.mxu1 %v777_v35  ;;  %v791_v33 = vld [vmem:[#allocation8 + $0x5e0] sm:$0xff]  ;;  %v793_v34 = vld [vmem:[#allocation8 + $0x5f0] sm:$0xff]  ;;  %v780_v35 = vld [vmem:[#allocation8 + $0x588] sm:$0xff] }
 0x1db   : > { %929 = vmatprep.mubr.f32.mxu0 %v3393_v12  ;;  %1006 = vmatprep.mubr.f32.mxu1 %v3393_v12 }
 0x1dc   : > { %1017 = vmatprep.subr.mxu0 %v764_v22  ;;  %1094 = vmatprep.subr.mxu1 %v766_v36  ;;  %v782_v22 = vld [vmem:[#allocation8 + $0x598] sm:$0xff]  ;;  %v779_v36 = vld [vmem:[#allocation8 + $0x580] sm:$0xff] }
 0x1dd   : > { %930 = vmatmul.mubr.f32.gmra.mxu0 %v3723_v26  ;;  %1007 = vmatmul.mubr.f32.gmra.mxu1 %v3723_v26 }
 0x1de   : > { %1018 = vmatpush1.msra.mxu0 %v763_v37  ;;  %1095 = vmatpush1.msra.mxu1 %v765_v38  ;;  %v781_v37 = vld [vmem:[#allocation8 + $0x590] sm:$0xff]  ;;  %v768_v38 = vld [vmem:[#allocation8 + $0x528] sm:$0xff] }
 0x1df   : > { %1019 = vmatprep.subr.mxu0 %v752_v39  ;;  %1096 = vmatprep.subr.mxu1 %v754_v40  ;;  %v770_v39 = vld [vmem:[#allocation8 + $0x538] sm:$0xff]  ;;  %v767_v40 = vld [vmem:[#allocation8 + $0x520] sm:$0xff] }
 0x1e0   : > { %1020 = vmatpush1.msra.mxu0 %v751_v41  ;;  %1097 = vmatpush1.msra.mxu1 %v753_v42  ;;  %v769_v41 = vld [vmem:[#allocation8 + $0x530] sm:$0xff]  ;;  %v756_v42 = vld [vmem:[#allocation8 + $0x4c8] sm:$0xff] }
 0x1e1   : > { %1021 = vmatprep.subr.mxu0 %v740_v43  ;;  %1098 = vmatprep.subr.mxu1 %v742_v44  ;;  %v758_v43 = vld [vmem:[#allocation8 + $0x4d8] sm:$0xff]  ;;  %v755_v44 = vld [vmem:[#allocation8 + $0x4c0] sm:$0xff] }
 0x1e2   : > { %1022 = vmatpush1.msra.mxu0 %v739_v45  ;;  %1099 = vmatpush1.msra.mxu1 %v741_v46  ;;  %v757_v45 = vld [vmem:[#allocation8 + $0x4d0] sm:$0xff]  ;;  %v744_v46 = vld [vmem:[#allocation8 + $0x468] sm:$0xff] }
 0x1e3   : > { %1023 = vmatprep.subr.mxu0 %v728_v47  ;;  %1100 = vmatprep.subr.mxu1 %v730_v48  ;;  %v746_v47 = vld [vmem:[#allocation8 + $0x478] sm:$0xff]  ;;  %v743_v48 = vld [vmem:[#allocation8 + $0x460] sm:$0xff] }
 0x1e4   : > { %1024 = vmatpush1.msra.mxu0 %v727_v49  ;;  %1101 = vmatpush1.msra.mxu1 %v729_v50  ;;  %v745_v49 = vld [vmem:[#allocation8 + $0x470] sm:$0xff]  ;;  %v732_v50 = vld [vmem:[#allocation8 + $0x408] sm:$0xff] }
 0x1e5   : > { %1025 = vmatprep.subr.mxu0 %v716_v51  ;;  %1102 = vmatprep.subr.mxu1 %v718_v52  ;;  %v734_v51 = vld [vmem:[#allocation8 + $0x418] sm:$0xff]  ;;  %v731_v52 = vld [vmem:[#allocation8 + $0x400] sm:$0xff] }
 0x1e6   : > { %1026 = vmatpush1.msra.mxu0 %v715_v53  ;;  %1103 = vmatpush1.msra.mxu1 %v717_v54  ;;  %v733_v53 = vld [vmem:[#allocation8 + $0x410] sm:$0xff]  ;;  %v720_v54 = vld [vmem:[#allocation8 + $0x3a8] sm:$0xff] }
 0x1e7   : > { %1027 = vmatprep.subr.mxu0 %v704_v55  ;;  %1104 = vmatprep.subr.mxu1 %v706_v56  ;;  %v722_v55 = vld [vmem:[#allocation8 + $0x3b8] sm:$0xff]  ;;  %v719_v56 = vld [vmem:[#allocation8 + $0x3a0] sm:$0xff] }
 0x1e8   : > { %1028 = vmatpush1.msra.mxu0 %v703_v57  ;;  %1105 = vmatpush1.msra.mxu1 %v705_v58  ;;  %v721_v57 = vld [vmem:[#allocation8 + $0x3b0] sm:$0xff]  ;;  %v708_v58 = vld [vmem:[#allocation8 + $0x348] sm:$0xff] }
 0x1e9   : > { %1029 = vmatprep.subr.mxu0 %v692_v59  ;;  %1106 = vmatprep.subr.mxu1 %v694_v60  ;;  %v710_v59 = vld [vmem:[#allocation8 + $0x358] sm:$0xff]  ;;  %v707_v60 = vld [vmem:[#allocation8 + $0x340] sm:$0xff] }
 0x1ea   : > { %1030 = vmatpush1.msra.mxu0 %v691_v61  ;;  %1107 = vmatpush1.msra.mxu1 %v693_v62  ;;  %v709_v61 = vld [vmem:[#allocation8 + $0x350] sm:$0xff]  ;;  %v696_v62 = vld [vmem:[#allocation8 + $0x2e8] sm:$0xff] }
 0x1eb   : > { %1031 = vmatprep.subr.mxu0 %v680_v63  ;;  %1108 = vmatprep.subr.mxu1 %v682_v0  ;;  %v698_v63 = vld [vmem:[#allocation8 + $0x2f8] sm:$0xff]  ;;  %v695_v0 = vld [vmem:[#allocation8 + $0x2e0] sm:$0xff] }
 0x1ec   : > { %1032 = vmatpush1.msra.mxu0 %v679_v1  ;;  %1109 = vmatpush1.msra.mxu1 %v681_v2  ;;  %v697_v1 = vld [vmem:[#allocation8 + $0x2f0] sm:$0xff]  ;;  %v684_v2 = vld [vmem:[#allocation8 + $0x288] sm:$0xff] }
 0x1ed   : > { %1033 = vmatprep.subr.mxu0 %v668_v3  ;;  %1110 = vmatprep.subr.mxu1 %v670_v4  ;;  %v686_v3 = vld [vmem:[#allocation8 + $0x298] sm:$0xff]  ;;  %v683_v4 = vld [vmem:[#allocation8 + $0x280] sm:$0xff] }
 0x1ee   : > { %1034 = vmatpush1.msra.mxu0 %v667_v5  ;;  %1111 = vmatpush1.msra.mxu1 %v669_v6  ;;  %v685_v5 = vld [vmem:[#allocation8 + $0x290] sm:$0xff]  ;;  %v672_v6 = vld [vmem:[#allocation8 + $0x228] sm:$0xff] }
 0x1ef   : > { %1035 = vmatprep.subr.mxu0 %v656_v7  ;;  %1112 = vmatprep.subr.mxu1 %v658_v8  ;;  %v674_v7 = vld [vmem:[#allocation8 + $0x238] sm:$0xff]  ;;  %v671_v8 = vld [vmem:[#allocation8 + $0x220] sm:$0xff] }
 0x1f0   : > { %1036 = vmatpush1.msra.mxu0 %v655_v9  ;;  %1113 = vmatpush1.msra.mxu1 %v657_v10  ;;  %v673_v9 = vld [vmem:[#allocation8 + $0x230] sm:$0xff]  ;;  %v660_v10 = vld [vmem:[#allocation8 + $0x1c8] sm:$0xff] }
 0x1f1   : > { %1037 = vmatprep.subr.mxu0 %v644_v11  ;;  %1114 = vmatprep.subr.mxu1 %v646_v13  ;;  %v662_v11 = vld [vmem:[#allocation8 + $0x1d8] sm:$0xff]  ;;  %v659_v13 = vld [vmem:[#allocation8 + $0x1c0] sm:$0xff] }
 0x1f2   : > { %1038 = vmatpush1.msra.mxu0 %v643_v14  ;;  %1115 = vmatpush1.msra.mxu1 %v645_v15  ;;  %v661_v14 = vld [vmem:[#allocation8 + $0x1d0] sm:$0xff]  ;;  %v648_v15 = vld [vmem:[#allocation8 + $0x168] sm:$0xff] }
 0x1f3   : > { %1039 = vmatprep.subr.mxu0 %v632_v16  ;;  %1116 = vmatprep.subr.mxu1 %v634_v17  ;;  %v650_v16 = vld [vmem:[#allocation8 + $0x178] sm:$0xff]  ;;  %v647_v17 = vld [vmem:[#allocation8 + $0x160] sm:$0xff] }
 0x1f4   : > { %1040 = vmatpush1.msra.mxu0 %v631_v18  ;;  %1117 = vmatpush1.msra.mxu1 %v633_v19  ;;  %v649_v18 = vld [vmem:[#allocation8 + $0x170] sm:$0xff]  ;;  %v636_v19 = vld [vmem:[#allocation8 + $0x108] sm:$0xff] }
 0x1f5   : > { %1041 = vmatprep.subr.mxu0 %v620_v20  ;;  %1118 = vmatprep.subr.mxu1 %v622_v21  ;;  %v638_v20 = vld [vmem:[#allocation8 + $0x118] sm:$0xff]  ;;  %v635_v21 = vld [vmem:[#allocation8 + $0x100] sm:$0xff] }
 0x1f6   : > { %1042 = vmatpush1.msra.mxu0 %v619_v23  ;;  %1119 = vmatpush1.msra.mxu1 %v621_v24  ;;  %v637_v23 = vld [vmem:[#allocation8 + $0x110] sm:$0xff]  ;;  %v624_v24 = vld [vmem:[#allocation8 + $0xa8] sm:$0xff] }
 0x1f7   : > { %1043 = vmatprep.subr.mxu0 %v608_v25  ;;  %1120 = vmatprep.subr.mxu1 %v610_v27  ;;  %v626_v25 = vld [vmem:[#allocation8 + $0xb8] sm:$0xff]  ;;  %v623_v27 = vld [vmem:[#allocation8 + $0xa0] sm:$0xff] }
 0x1f8   : > { %1044 = vmatpush1.msra.mxu0 %v607_v29  ;;  %1077 = vmatprep.mubr.f32.mxu0 %v3393_v12  ;;  %v625_v29 = vld [vmem:[#allocation8 + $0xb0] sm:$0xff] }
 0x1f9   : > { %1121 = vmatpush1.msra.mxu1 %v609_v30  ;;  %1154 = vmatprep.mubr.f32.mxu1 %v3393_v12  ;;  %v612_v30 = vld [vmem:[#allocation8 + $0x48] sm:$0xff] }
 0x1fa   : > { %1078 = vmatmul.mubr.f32.vlgmr.msra.gmra.mxu0 %v3719_v28  ;;  %1155 = vmatmul.mubr.f32.vlgmr.msra.gmra.mxu1 %v3719_v28 }
 0x1fb   : > { %1167 = vmatprep.subr.mxu0 %v792_v31  ;;  %1244 = vmatprep.subr.mxu1 %v794_v32  ;;  %v614_v31 = vld [vmem:[#allocation8 + $0x58] sm:$0xff]  ;;  %v611_v32 = vld [vmem:[#allocation8 + $0x40] sm:$0xff] }
 0x1fc   : > { %1168 = vmatpush1.msra.mxu0 %v791_v33  ;;  %1245 = vmatpush1.msra.mxu1 %v793_v34  ;;  %v613_v33 = vld [vmem:[#allocation8 + $0x50] sm:$0xff]  ;;  %v799_v34 = vlaneseq }
 0x1fd   : > { %1169 = vmatprep.subr.mxu0 %v780_v35  ;;  %1246 = vmatprep.subr.mxu1 %v782_v22 }
 0x1fe   : > { %1083 = vmatprep.mubr.f32.mxu0 %v3393_v12  ;;  %1160 = vmatprep.mubr.f32.mxu1 %v3393_v12  ;;  %v3745_v35 = vshrl.u32 %v799_v34, 7 }
 0x1ff   : > { %1170 = vmatpush1.msra.mxu0 %v779_v36  ;;  %1247 = vmatpush1.msra.mxu1 %v781_v37  ;;  %v795_v37 = vld [vmem:[#allocation9] sm:$0xff] }
 0x200   : > { %1084 = vmatmul.mubr.f32.gmra.mxu0 %v3723_v26  ;;  %1161 = vmatmul.mubr.f32.gmra.mxu1 %v3723_v26  ;;  %v801_v22 = vsub.s32 0, %v3745_v35  ;;  %v809_v36 = vsub.s32 2, %v3745_v35 }
 0x201   : > { %1171 = vmatprep.subr.mxu0 %v768_v38  ;;  %1248 = vmatprep.subr.mxu1 %v770_v39  ;;  %v805_v38 = vsub.s32 1, %v3745_v35 }
 0x202   : > { %1172 = vmatpush1.msra.mxu0 %v767_v40  ;;  %1249 = vmatpush1.msra.mxu1 %v769_v41  ;;  %v802_v39 = vrot.slane %v795_v37, %v801_v22 }
 0x203   : > { %1173 = vmatprep.subr.mxu0 %v756_v42  ;;  %1250 = vmatprep.subr.mxu1 %v758_v43 }
 0x204   : > { %1174 = vmatpush1.msra.mxu0 %v755_v44  ;;  %1251 = vmatpush1.msra.mxu1 %v757_v45 }
 0x205   : > { %1175 = vmatprep.subr.mxu0 %v744_v46  ;;  %1252 = vmatprep.subr.mxu1 %v746_v47 }
 0x206   : > { %1176 = vmatpush1.msra.mxu0 %v743_v48  ;;  %1253 = vmatpush1.msra.mxu1 %v745_v49 }
 0x207   : > { %1177 = vmatprep.subr.mxu0 %v732_v50  ;;  %1254 = vmatprep.subr.mxu1 %v734_v51 }
 0x208   : > { %1178 = vmatpush1.msra.mxu0 %v731_v52  ;;  %1255 = vmatpush1.msra.mxu1 %v733_v53 }
 0x209   : > { %1179 = vmatprep.subr.mxu0 %v720_v54  ;;  %1256 = vmatprep.subr.mxu1 %v722_v55 }
 0x20a   : > { %1180 = vmatpush1.msra.mxu0 %v719_v56  ;;  %1257 = vmatpush1.msra.mxu1 %v721_v57  ;;  %v817_v57 = vsub.s32 4, %v3745_v35 }
 0x20b   : > { %1181 = vmatprep.subr.mxu0 %v708_v58  ;;  %1258 = vmatprep.subr.mxu1 %v710_v59  ;;  %v825_v58 = vsub.s32 6, %v3745_v35  ;;  %v821_v59 = vsub.s32 5, %v3745_v35 }
 0x20c   : > { %1182 = vmatpush1.msra.mxu0 %v707_v60  ;;  %1259 = vmatpush1.msra.mxu1 %v709_v61  ;;  %v829_v60 = vsub.s32 7, %v3745_v35  ;;  %v818_v61 = vrot.slane %v795_v37, %v817_v57 }
 0x20d   : > { %1183 = vmatprep.subr.mxu0 %v696_v62  ;;  %1260 = vmatprep.subr.mxu1 %v698_v63  ;;  %v826_v62 = vrot.slane %v795_v37, %v825_v58  ;;  %v822_v63 = vrot.slane %v795_v37, %v821_v59 }
 0x20e   : > { %1184 = vmatpush1.msra.mxu0 %v695_v0  ;;  %1261 = vmatpush1.msra.mxu1 %v697_v1  ;;  %v830_v0 = vrot.slane %v795_v37, %v829_v60 }
 0x20f   : > { %1185 = vmatprep.subr.mxu0 %v684_v2  ;;  %1262 = vmatprep.subr.mxu1 %v686_v3 }
 0x210   : > { %1186 = vmatpush1.msra.mxu0 %v683_v4  ;;  %1263 = vmatpush1.msra.mxu1 %v685_v5 }
 0x211   : > { %1187 = vmatprep.subr.mxu0 %v672_v6  ;;  %1264 = vmatprep.subr.mxu1 %v674_v7 }
 0x212   : > { %1188 = vmatpush1.msra.mxu0 %v671_v8  ;;  %1265 = vmatpush1.msra.mxu1 %v673_v9 }
 0x213   : > { %1189 = vmatprep.subr.mxu0 %v660_v10  ;;  %1266 = vmatprep.subr.mxu1 %v662_v11 }
 0x214   : > { %1190 = vmatpush1.msra.mxu0 %v659_v13  ;;  %1267 = vmatpush1.msra.mxu1 %v661_v14 }
 0x215   : > { %1191 = vmatprep.subr.mxu0 %v648_v15  ;;  %1268 = vmatprep.subr.mxu1 %v650_v16 }
 0x216   : > { %1192 = vmatpush1.msra.mxu0 %v647_v17  ;;  %1269 = vmatpush1.msra.mxu1 %v649_v18  ;;  %v796_v18 = vld [vmem:[#allocation9 + $0x8] sm:$0xf] }
 0x217   : > { %1193 = vmatprep.subr.mxu0 %v636_v19  ;;  %1270 = vmatprep.subr.mxu1 %v638_v20  ;;  %v834_v19 = vrot.slane %v796_v18, %v801_v22  ;;  %v842_v20 = vrot.slane %v796_v18, %v809_v36 }
 0x218   : > { %1194 = vmatpush1.msra.mxu0 %v635_v21  ;;  %1271 = vmatpush1.msra.mxu1 %v637_v23  ;;  %v838_v21 = vrot.slane %v796_v18, %v805_v38 }
 0x219   : > { %1195 = vmatprep.subr.mxu0 %v624_v24  ;;  %1272 = vmatprep.subr.mxu1 %v626_v25 }
 0x21a   : > { %1196 = vmatpush1.msra.mxu0 %v623_v27  ;;  %1273 = vmatpush1.msra.mxu1 %v625_v29 }
 0x21b   : > { %1197 = vmatprep.subr.mxu0 %v612_v30  ;;  %1274 = vmatprep.subr.mxu1 %v614_v31 }
 0x21c   : > { %1198 = vmatpush1.msra.mxu0 %v611_v32  ;;  %1231 = vmatprep.mubr.f32.mxu0 %v3393_v12 }
 0x21d   : > { %1275 = vmatpush1.msra.mxu1 %v613_v33  ;;  %1308 = vmatprep.mubr.f32.mxu1 %v3393_v12 }
 0x21e   : > { %1232 = vmatmul.mubr.f32.vlgmr.msra.gmra.mxu0 %v3719_v28  ;;  %1309 = vmatmul.mubr.f32.vlgmr.msra.gmra.mxu1 %v3719_v28  ;;  %v813_v28 = vsub.s32 3, %v3745_v35 }
 0x21f   : > { %1237 = vmatprep.mubr.f32.mxu0 %v3393_v12  ;;  %1314 = vmatprep.mubr.f32.mxu1 %v3393_v12  ;;  %v810_v12 = vrot.slane %v795_v37, %v809_v36 }
 0x220   : > { %v814_v40 = vrot.slane %v795_v37, %v813_v28  ;;  %v846_v23 = vrot.slane %v796_v18, %v813_v28 }
 0x222   : > { %1238 = vmatmul.mubr.f32.gmra.mxu0 %v3723_v26  ;;  %1315 = vmatmul.mubr.f32.gmra.mxu1 %v3723_v26  ;;  %v806_v26 = vrot.slane %v795_v37, %v805_v38 }
 0x297   : > { %v925_v41 = vpop.f32.mrf.mxu0  ;;  %v1002_v42 = vpop.f32.mrf.mxu1 }
 0x298   : > { %v926_v43 = vadd.f32 %v925_v41, %v802_v39  ;;  %v1003_v44 = vadd.f32 %v1002_v42, %v810_v12 }
 0x299   : > { %v927_v45 = vpop.f32.mrf.mxu0  ;;  %v1004_v46 = vpop.f32.mrf.mxu1 }
 0x29a   : > { %1321 = vst [vmem:[#allocation2] sm:$0xff] %v926_v43  ;;  %1323 = vst [vmem:[#allocation2 + $0x10] sm:$0xff] %v1003_v44  ;;  %v928_v47 = vadd.f32 %v927_v45, %v806_v26  ;;  %v1005_v48 = vadd.f32 %v1004_v46, %v814_v40 }
 0x29c   : > { %1322 = vst [vmem:[#allocation2 + $0x8] sm:$0xff] %v928_v47  ;;  %1324 = vst [vmem:[#allocation2 + $0x18] sm:$0xff] %v1005_v48 }
 0x29d   : > { %v931_v49 = vpop.f32.mrf.mxu0  ;;  %v1008_v50 = vpop.f32.mrf.mxu1 }
 0x29e   : > { %v932_v51 = vadd.f32 %v931_v49, %v802_v39  ;;  %v1009_v52 = vadd.f32 %v1008_v50, %v810_v12 }
 0x29f   : > { %v933_v53 = vpop.f32.mrf.mxu0  ;;  %v1010_v54 = vpop.f32.mrf.mxu1 }
 0x2a0   : > { %1333 = vst [vmem:[#allocation2 + $0x60] sm:$0xff] %v932_v51  ;;  %1335 = vst [vmem:[#allocation2 + $0x70] sm:$0xff] %v1009_v52  ;;  %v934_v55 = vadd.f32 %v933_v53, %v806_v26  ;;  %v1011_v56 = vadd.f32 %v1010_v54, %v814_v40 }
 0x2a2   : > { %1334 = vst [vmem:[#allocation2 + $0x68] sm:$0xff] %v934_v55  ;;  %1336 = vst [vmem:[#allocation2 + $0x78] sm:$0xff] %v1011_v56 }
 0x2ba   : > { %v1079_v1 = vpop.f32.mrf.mxu0  ;;  %v1156_v2 = vpop.f32.mrf.mxu1 }
 0x2bb   : > { %v1080_v3 = vadd.f32 %v1079_v1, %v818_v61  ;;  %v1157_v4 = vadd.f32 %v1156_v2, %v826_v62 }
 0x2bc   : > { %v1081_v5 = vpop.f32.mrf.mxu0  ;;  %v1158_v6 = vpop.f32.mrf.mxu1 }
 0x2bd   : > { %1325 = vst [vmem:[#allocation2 + $0x20] sm:$0xff] %v1080_v3  ;;  %1327 = vst [vmem:[#allocation2 + $0x30] sm:$0xff] %v1157_v4  ;;  %v1082_v7 = vadd.f32 %v1081_v5, %v822_v63  ;;  %v1159_v8 = vadd.f32 %v1158_v6, %v830_v0 }
 0x2bf   : > { %1326 = vst [vmem:[#allocation2 + $0x28] sm:$0xff] %v1082_v7  ;;  %1328 = vst [vmem:[#allocation2 + $0x38] sm:$0xff] %v1159_v8 }
 0x2c0   : > { %v1085_v9 = vpop.f32.mrf.mxu0  ;;  %v1162_v10 = vpop.f32.mrf.mxu1 }
 0x2c1   : > { %v1086_v11 = vadd.f32 %v1085_v9, %v818_v61  ;;  %v1163_v13 = vadd.f32 %v1162_v10, %v826_v62 }
 0x2c2   : > { %v1087_v14 = vpop.f32.mrf.mxu0  ;;  %v1164_v15 = vpop.f32.mrf.mxu1 }
 0x2c3   : > { %1337 = vst [vmem:[#allocation2 + $0x80] sm:$0xff] %v1086_v11  ;;  %1339 = vst [vmem:[#allocation2 + $0x90] sm:$0xff] %v1163_v13  ;;  %v1088_v16 = vadd.f32 %v1087_v14, %v822_v63  ;;  %v1165_v17 = vadd.f32 %v1164_v15, %v830_v0 }
 0x2c5   : > { %1338 = vst [vmem:[#allocation2 + $0x88] sm:$0xff] %v1088_v16  ;;  %1340 = vst [vmem:[#allocation2 + $0x98] sm:$0xff] %v1165_v17 }
 0x2de   : > { %v1233_v24 = vpop.f32.mrf.mxu0  ;;  %v1310_v25 = vpop.f32.mrf.mxu1 }
 0x2df   : > { %v1234_v27 = vadd.f32 %v1233_v24, %v834_v19  ;;  %v1311_v29 = vadd.f32 %v1310_v25, %v842_v20 }
 0x2e0   : > { %v1235_v30 = vpop.f32.mrf.mxu0  ;;  %v1312_v31 = vpop.f32.mrf.mxu1 }
 0x2e1   : > { %1329 = vst [vmem:[#allocation2 + $0x40] sm:$0xff] %v1234_v27  ;;  %1331 = vst [vmem:[#allocation2 + $0x50] sm:$0xff] %v1311_v29  ;;  %v1236_v32 = vadd.f32 %v1235_v30, %v838_v21  ;;  %v1313_v33 = vadd.f32 %v1312_v31, %v846_v23 }
 0x2e2   : > { %v1239_v34 = vpop.f32.mrf.mxu0  ;;  %v1316_v22 = vpop.f32.mrf.mxu1 }
 0x2e3   : > { %1330 = vst [vmem:[#allocation2 + $0x48] sm:$0xff] %v1236_v32  ;;  %1332 = vst [vmem:[#allocation2 + $0x58] sm:$0xff] %v1313_v33  ;;  %v1240_v36 = vadd.f32 %v1239_v34, %v834_v19  ;;  %v1317_v37 = vadd.f32 %v1316_v22, %v842_v20 }
 0x2e4   : > { %v1241_v38 = vpop.f32.mrf.mxu0  ;;  %v1318_v39 = vpop.f32.mrf.mxu1 }
 0x2e5   : > { %1341 = vst [vmem:[#allocation2 + $0xa0] sm:$0xff] %v1240_v36  ;;  %1343 = vst [vmem:[#allocation2 + $0xb0] sm:$0xff] %v1317_v37  ;;  %v1242_v35 = vadd.f32 %v1241_v38, %v838_v21  ;;  %v1319_v28 = vadd.f32 %v1318_v39, %v846_v23 }
 0x2e7   : > { %1342 = vst [vmem:[#allocation2 + $0xa8] sm:$0xff] %v1242_v35  ;;  %1344 = vst [vmem:[#allocation2 + $0xb8] sm:$0xff] %v1319_v28 }
 0x2e8 PF: > { %v1355_v12 = vld [vmem:[#allocation2 + $0x80] sm:$0xff]  ;;  %s2660_s21 = sshll.u32 %s3362_s14, 3  ;;  %v3394_v26 = vmov 0.0   ;;  %vm3395_vm0 = vmmov 0   ;;  %vm1429_vm1 = vcmask 130048   ;;  %v1357_v51 = vld [vmem:[#allocation2 + $0x88] sm:$0xff] }
 0x2e9   : > { %2806 = vmatprep.subr.mxu0 %v3394_v26  ;;  %2810 = vmatprep.mubr.msk.f32.mxu0 %vm3395_vm0, %v3394_v26  ;;  %s1348_s6 = sshra.s32 %s2660_s21, 3  ;;  %v1354_v40 = vld [vmem:[#allocation2 + $0x20] sm:$0xff]  ;;  %v1356_v52 = vld [vmem:[#allocation2 + $0x28] sm:$0xff]  ;;  %v1516_v56 = vld [vmem:[#allocation2 + $0x90] sm:$0xff]  ;;  %s3987_s11 = sld [smem:[#allocation29_spill]] }
 0x2ea   : > { %2807 = vmatpush3.xpose.msra.mxu0 %v1355_v12  ;;  %s2676_s28 = smul.u32 96, %s1348_s6  ;;  %2813 = vmatprep.subr.mxu1 %v3394_v26  ;;  %v1515_v57 = vld [vmem:[#allocation2 + $0x30] sm:$0xff]  ;;  %v1518_v6 = vld [vmem:[#allocation2 + $0x98] sm:$0xff]  ;;  %v1675_v13 = vld [vmem:[#allocation2 + $0x40] sm:$0xff]  ;;  %s1346_s13 = scalar_lea.vmem %s3677_s7, %s2660_s21 [#allocation3] }
 0x2eb   : > { %2808 = vmatprep.subr.mxu0 %v3394_v26  ;;  %2817 = vmatprep.mubr.msk.f32.mxu1 %vm3395_vm0, %v3394_v26  ;;  %v1517_v7 = vld [vmem:[#allocation2 + $0x38] sm:$0xff]  ;;  %v1677_v30 = vld [vmem:[#allocation2 + $0x48] sm:$0xff]  ;;  %v1835_v22 = vld [vmem:[#allocation2 + $0x50] sm:$0xff]  ;;  %s3988_s8 = sld [smem:[#allocation30_spill]] }
 0x2ec   : > { %s3781_s4 = scalar_lea.vmem [#allocation2], %s2676_s28  ;;  %2814 = vmatpush3.msra.mxu1 %v1357_v51  ;;  %v1676_v11 = vld [vmem:[#allocation2 + $0xa0] sm:$0xff]  ;;  %v1836_v34 = vld [vmem:[#allocation2 + $0xb0] sm:$0xff]  ;;  %s3989_s15 = sld [smem:[#allocation31_spill]] }
 0x2ed   : > { %2815 = vmatprep.subr.mxu1 %v3394_v26  ;;  %v2040_v51 = vld [vmem:[#allocation11 + $0x170] sm:$0xff]  ;;  %s3990_s28 = sld [smem:[#allocation33_spill]] }
 0x2ee   : > { %2809 = vmatpush3.xpose.msra.mxu0 %v1354_v40  ;;  %v1353_v41 = vld [vmem:[%s3781_s4] sm:$0xff]  ;;  %2816 = vmatpush3.msra.mxu1 %v1356_v52  ;;  %v1514_v58 = vld [vmem:[%s3781_s4 + $0x8] sm:$0xff]  ;;  %v1674_v14 = vld [vmem:[%s3781_s4 + $0x10] sm:$0xff] }
 0x2ef   : > { %2827 = vmatprep.subr.mxu0 %v3394_v26  ;;  %2820 = vmatprep.subr.mxu1 %v3394_v26  ;;  %v1678_v29 = vld [vmem:[#allocation2 + $0xa8] sm:$0xff]  ;;  %v1834_v36 = vld [vmem:[%s3781_s4 + $0x18] sm:$0xff]  ;;  %s3991_s4 = sld [smem:[#allocation21_spill]] }
 0x2f0   : > { %v2055_v52 = vld [vmem:[#allocation11 + $0x1e8] sm:$0xff] }
 0x2f1   : > { %2811 = vmatmul.mubr.f32.vlgmr.msra.gmra.mxu0 %v1353_v41 }
 0x2f2   : > { %2831 = vmatprep.mubr.msk.f32.mxu0 %vm3395_vm0, %v3394_v26  ;;  %2828 = vmatpush3.msra.mxu0 %v1518_v6  ;;  %v2031_v6 = vld [vmem:[#allocation11 + $0x128] sm:$0xff] }
 0x2f3   : > { %2829 = vmatprep.subr.mxu0 %v3394_v26 }
 0x2f4   : > { %2830 = vmatpush3.msra.mxu0 %v1517_v7  ;;  %v2046_v7 = vld [vmem:[#allocation11 + $0x1a0] sm:$0xff] }
 0x2f5   : > { %2834 = vmatprep.subr.mxu0 %v3394_v26 }
 0x3b1   : > { %v1424_v42 = vpop.f32.mrf.mxu0 }
 0x3b2   : > { %v1428_v43 = vmul.f32 0.17677669, %v1424_v42 }
 0x3b3   : > { %v2812_v44 = vpop.f32.mrf.mxu0 }
 0x3b4   : > { %v1430_v45 = vsel %vm1429_vm1, %v1428_v43, -inf }
 0x3b5   : > { %1431 = vmax.xlane.f32.xlu0 %v1430_v45  ;;  %v1838_v45 = vld [vmem:[#allocation2 + $0xb8] sm:$0xff] }
 0x43e   : > { %v1432_v46 = vpop.xlane.xlu0 %1431 }
 0x43f   : > { %v1433_v47 = vsub.f32 %v1428_v43, %v1432_v46  ;;  %v1837_v46 = vld [vmem:[#allocation2 + $0x58] sm:$0xff] }
 0x441   : > { %v1434_v48 = vmul.f32 1.442695, %v1433_v47  ;;  %v2025_v47 = vld [vmem:[#allocation11 + $0xf8] sm:$0xff] }
 0x443   : > { %3038 = vpow2.f32 %v1434_v48  ;;  %v2057_v48 = vld [vmem:[#allocation11 + $0x1f8] sm:$0xff] }
 0x450   : > { %v3039_v49 = vpop.eup %3038 }
 0x451   : > { %v1436_v50 = vsel %vm1429_vm1, %v3039_v49, 0.0 }
 0x452   : > { %1437 = vadd.xlane.f32.xlu0 %v1436_v50  ;;  %v2056_v50 = vld [vmem:[#allocation11 + $0x1f0] sm:$0xff] }
 0x4db   : > { %v1438_v53 = vpop.xlane.xlu0 %1437 }
 0x4dc   : > { %3040 = vrcp.f32 %v1438_v53  ;;  %v2039_v53 = vld [vmem:[#allocation11 + $0x168] sm:$0xff] }
 0x4e9   : > { %v3041_v54 = vpop.eup %3040 }
 0x4ea   : > { %v1440_v55 = vmul.f32 %v3041_v54, %v3039_v49  ;;  %v2041_v49 = vld [vmem:[#allocation11 + $0x178] sm:$0xff]  ;;  %v2054_v54 = vld [vmem:[#allocation11 + $0x1e0] sm:$0xff] }
 0x4ec   : > { %2818 = vmatmul.mubr.msk.f32.vlgmr.msra.gmra.mxu1 %vm1429_vm1, %v1440_v55  ;;  %v2038_v55 = vld [vmem:[#allocation11 + $0x160] sm:$0xff] }
 0x4ed   : > { %2821 = vmatpush3.xpose.msra.mxu1 %v1516_v56  ;;  %2824 = vmatprep.mubr.msk.f32.mxu1 %vm3395_vm0, %v3394_v26  ;;  %v2053_v56 = vld [vmem:[#allocation11 + $0x1d8] sm:$0xff] }
 0x4ee   : > { %2822 = vmatprep.subr.mxu1 %v3394_v26 }
 0x4f1   : > { %2823 = vmatpush3.xpose.msra.mxu1 %v1515_v57  ;;  %v2037_v57 = vld [vmem:[#allocation11 + $0x158] sm:$0xff] }
 0x4f2   : > { %2841 = vmatprep.subr.mxu1 %v3394_v26 }
 0x4f4   : > { %2825 = vmatmul.mubr.f32.vlgmr.msra.gmra.mxu1 %v1514_v58  ;;  %v2052_v58 = vld [vmem:[#allocation11 + $0x1d0] sm:$0xff] }
 0x4f5   : > { %2845 = vmatprep.mubr.msk.f32.mxu1 %vm3395_vm0, %v3394_v26  ;;  %2842 = vmatpush3.msra.mxu1 %v1678_v29  ;;  %v2006_v29 = vld [vmem:[#allocation11 + $0x60] sm:$0xff] }
 0x4f6   : > { %2843 = vmatprep.subr.mxu1 %v3394_v26 }
 0x4f7   : > { %2844 = vmatpush3.msra.mxu1 %v1677_v30  ;;  %v2021_v30 = vld [vmem:[#allocation11 + $0xd8] sm:$0xff] }
 0x4f8   : > { %2848 = vmatprep.subr.mxu1 %v3394_v26 }
 0x5ac   : > { %v3799_v59 = vpop.f32.mrf.mxu1 }
 0x5ae   : > { %v2819_v60 = vpop.f32.mrf.mxu1 }
 0x5af   : > { %v2036_v60 = vld [vmem:[#allocation11 + $0x150] sm:$0xff] }
 0x5b4   : > { %v1585_v61 = vpop.f32.mrf.mxu1 }
 0x5b5   : > { %v1589_v62 = vmul.f32 0.17677669, %v1585_v61  ;;  %v2051_v61 = vld [vmem:[#allocation11 + $0x1c8] sm:$0xff] }
 0x5b6   : > { %v2826_v63 = vpop.f32.mrf.mxu1 }
 0x5b7   : > { %v1590_v0 = vsel %vm1429_vm1, %v1589_v62, -inf  ;;  %v2050_v63 = vld [vmem:[#allocation11 + $0x1c0] sm:$0xff] }
 0x5b8   : > { %1591 = vmax.xlane.f32.xlu1 %v1590_v0  ;;  %v2034_v0 = vld [vmem:[#allocation11 + $0x140] sm:$0xff] }
 0x641   : > { %v1592_v1 = vpop.xlane.xlu1 %1591 }
 0x642   : > { %v1593_v2 = vsub.f32 %v1589_v62, %v1592_v1  ;;  %v2035_v62 = vld [vmem:[#allocation11 + $0x148] sm:$0xff]  ;;  %v2049_v1 = vld [vmem:[#allocation11 + $0x1b8] sm:$0xff] }
 0x644   : > { %v1594_v3 = vmul.f32 1.442695, %v1593_v2  ;;  %v2033_v2 = vld [vmem:[#allocation11 + $0x138] sm:$0xff] }
 0x646   : > { %3042 = vpow2.f32 %v1594_v3  ;;  %v2048_v3 = vld [vmem:[#allocation11 + $0x1b0] sm:$0xff] }
 0x653   : > { %v3043_v4 = vpop.eup %3042 }
 0x654   : > { %v1596_v5 = vsel %vm1429_vm1, %v3043_v4, 0.0 }
 0x655   : > { %1597 = vadd.xlane.f32.xlu1 %v1596_v5  ;;  %v2047_v5 = vld [vmem:[#allocation11 + $0x1a8] sm:$0xff] }
 0x6de   : > { %v1598_v8 = vpop.xlane.xlu1 %1597 }
 0x6df   : > { %3044 = vrcp.f32 %v1598_v8  ;;  %v2030_v8 = vld [vmem:[#allocation11 + $0x120] sm:$0xff] }
 0x6ec   : > { %v3045_v9 = vpop.eup %3044 }
 0x6ed   : > { %v1600_v10 = vmul.f32 %v3045_v9, %v3043_v4  ;;  %v2032_v4 = vld [vmem:[#allocation11 + $0x130] sm:$0xff]  ;;  %v2045_v9 = vld [vmem:[#allocation11 + $0x198] sm:$0xff] }
 0x6ef   : > { %2832 = vmatmul.mubr.msk.f32.vlgmr.msra.gmra.mxu0 %vm1429_vm1, %v1600_v10  ;;  %v2029_v10 = vld [vmem:[#allocation11 + $0x118] sm:$0xff] }
 0x6f0   : > { %2835 = vmatpush3.xpose.msra.mxu0 %v1676_v11  ;;  %2838 = vmatprep.mubr.msk.f32.mxu0 %vm3395_vm0, %v3394_v26  ;;  %v2044_v11 = vld [vmem:[#allocation11 + $0x190] sm:$0xff] }
 0x6f1   : > { %2836 = vmatprep.subr.mxu0 %v3394_v26 }
 0x6f4   : > { %2837 = vmatpush3.xpose.msra.mxu0 %v1675_v13  ;;  %v2028_v13 = vld [vmem:[#allocation11 + $0x110] sm:$0xff] }
 0x6f5   : > { %2855 = vmatprep.subr.mxu0 %v3394_v26 }
 0x6f7   : > { %2839 = vmatmul.mubr.f32.vlgmr.msra.gmra.mxu0 %v1674_v14  ;;  %v2043_v14 = vld [vmem:[#allocation11 + $0x188] sm:$0xff] }
 0x6f8   : > { %2859 = vmatprep.mubr.msk.f32.mxu0 %vm3395_vm0, %v3394_v26  ;;  %2856 = vmatpush3.msra.mxu0 %v1838_v45  ;;  %v2012_v45 = vld [vmem:[#allocation11 + $0x90] sm:$0xff] }
 0x6f9   : > { %2857 = vmatprep.subr.mxu0 %v3394_v26 }
 0x6fa   : > { %2858 = vmatpush3.msra.mxu0 %v1837_v46  ;;  %v1996_v46 = vld [vmem:[#allocation11 + $0x10] sm:$0xff] }
 0x6fb   : > { %2701 = vmatprep.subr.mxu0 %v2025_v47  ;;  %v2011_v47 = vld [vmem:[#allocation11 + $0x88] sm:$0xff] }
 0x7af   : > { %v3813_v15 = vpop.f32.mrf.mxu0 }
 0x7b1   : > { %v2833_v16 = vpop.f32.mrf.mxu0 }
 0x7b2   : > { %v2027_v16 = vld [vmem:[#allocation11 + $0x108] sm:$0xff] }
 0x7b7   : > { %v1745_v17 = vpop.f32.mrf.mxu0 }
 0x7b8   : > { %v1749_v18 = vmul.f32 0.17677669, %v1745_v17 }
 0x7b9   : > { %v2840_v19 = vpop.f32.mrf.mxu0 }
 0x7ba   : > { %v1750_v20 = vsel %vm1429_vm1, %v1749_v18, -inf }
 0x7bb   : > { %1751 = vmax.xlane.f32.xlu0 %v1750_v20  ;;  %v2009_v20 = vld [vmem:[#allocation11 + $0x78] sm:$0xff] }
 0x844   : > { %v1752_v21 = vpop.xlane.xlu0 %1751 }
 0x845   : > { %v1753_v23 = vsub.f32 %v1749_v18, %v1752_v21  ;;  %v2024_v21 = vld [vmem:[#allocation11 + $0xf0] sm:$0xff] }
 0x847   : > { %v1754_v24 = vmul.f32 1.442695, %v1753_v23  ;;  %v2008_v23 = vld [vmem:[#allocation11 + $0x70] sm:$0xff] }
 0x849   : > { %3046 = vpow2.f32 %v1754_v24  ;;  %v2023_v24 = vld [vmem:[#allocation11 + $0xe8] sm:$0xff] }
 0x856   : > { %v3047_v25 = vpop.eup %3046 }
 0x857   : > { %v1756_v27 = vsel %vm1429_vm1, %v3047_v25, 0.0 }
 0x858   : > { %1757 = vadd.xlane.f32.xlu1 %v1756_v27  ;;  %v2022_v27 = vld [vmem:[#allocation11 + $0xe0] sm:$0xff] }
 0x8e1   : > { %v1758_v31 = vpop.xlane.xlu1 %1757 }
 0x8e2   : > { %3048 = vrcp.f32 %v1758_v31  ;;  %v2005_v31 = vld [vmem:[#allocation11 + $0x58] sm:$0xff] }
 0x8ef   : > { %v3049_v32 = vpop.eup %3048 }
 0x8f0   : > { %v1760_v33 = vmul.f32 %v3049_v32, %v3047_v25  ;;  %v2007_v25 = vld [vmem:[#allocation11 + $0x68] sm:$0xff]  ;;  %v2020_v32 = vld [vmem:[#allocation11 + $0xd0] sm:$0xff] }
 0x8f2   : > { %2846 = vmatmul.mubr.msk.f32.vlgmr.msra.gmra.mxu1 %vm1429_vm1, %v1760_v33  ;;  %v2004_v33 = vld [vmem:[#allocation11 + $0x50] sm:$0xff] }
 0x8f3   : > { %2849 = vmatpush3.xpose.msra.mxu1 %v1836_v34  ;;  %2852 = vmatprep.mubr.msk.f32.mxu1 %vm3395_vm0, %v3394_v26  ;;  %v2019_v34 = vld [vmem:[#allocation11 + $0xc8] sm:$0xff] }
 0x8f4   : > { %2850 = vmatprep.subr.mxu1 %v3394_v26 }
 0x8f7   : > { %2851 = vmatpush3.xpose.msra.mxu1 %v1835_v22  ;;  %v2003_v22 = vld [vmem:[#allocation11 + $0x48] sm:$0xff] }
 0x8f8   : > { %2736 = vmatprep.subr.mxu1 %v2057_v48  ;;  %v1995_v48 = vld [vmem:[#allocation11 + $0x8] sm:$0xff] }
 0x8fa   : > { %2853 = vmatmul.mubr.f32.vlgmr.msra.gmra.mxu1 %v1834_v36  ;;  %v2002_v36 = vld [vmem:[#allocation11 + $0x40] sm:$0xff] }
 0x8fb   : > { %2737 = vmatpush3.msra.mxu1 %v2041_v49  ;;  %v2010_v49 = vld [vmem:[#allocation11 + $0x80] sm:$0xff] }
 0x8fc   : > { %2738 = vmatprep.subr.mxu1 %v2056_v50  ;;  %v1994_v50 = vld [vmem:[#allocation11] sm:$0xff] }
 0x8fd   : > { %2739 = vmatpush3.msra.mxu1 %v2040_v51  ;;  %v2042_v51 = vld [vmem:[#allocation11 + $0x180] sm:$0xff] }
 0x8fe   : > { %2740 = vmatprep.subr.mxu1 %v2055_v52  ;;  %v2026_v52 = vld [vmem:[#allocation11 + $0x100] sm:$0xff] }
 0x8ff   : > { %2741 = vmatpush3.msra.mxu1 %v2039_v53 }
 0x900   : > { %2742 = vmatprep.subr.mxu1 %v2054_v54 }
 0x901   : > { %2743 = vmatpush3.msra.mxu1 %v2038_v55 }
 0x902   : > { %2744 = vmatprep.subr.mxu1 %v2053_v56 }
 0x903   : > { %2745 = vmatpush3.msra.mxu1 %v2037_v57 }
 0x904   : > { %2746 = vmatprep.subr.mxu1 %v2052_v58  ;;  %v2666_v58 = vld [vmem:[%s3987_s11] ss:$0 sm:$0xff]  ;;  %s3992_s11 = sld [smem:[#allocation35_spill]] }
 0x905   : > { %2747 = vmatpush3.msra.mxu1 %v2036_v60 }
 0x906   : > { %2748 = vmatprep.subr.mxu1 %v2051_v61 }
 0x907   : > { %2749 = vmatpush3.msra.mxu1 %v2035_v62  ;;  %v1347_v62 = vld [vmem:[%s1346_s13] sm:$0xff]  ;;  %s2671_s13 = sshll.u32 %s3991_s4, 1 }
 0x908   : > { %2750 = vmatprep.subr.mxu1 %v2050_v63  ;;  %s2487_s5 = sadd.s32 %s3362_s14, %s2671_s13  ;;  %s3396_s14 = smov [#allocation15]  }
 0x909   : > { %2751 = vmatpush3.msra.mxu1 %v2034_v0  ;;  %s2672_s19 = sshll.u32 %s2487_s5, 7  ;;  %s3250_s10 = sshll.u32 %s3396_s14, 4  ;;  %s3251_s10 = int_to_ptr.vmem [resolvable:$false] %s3250_s10 }
 0x90a   : > { %2752 = vmatprep.subr.mxu1 %v2049_v1  ;;  %v2264_v1 = vld [vmem:[#allocation12 + $0xf0] sm:$0xff]  ;;  %s3252_s9 = scalar_lea.vmem %s3251_s10, 256 }
 0x90b   : > { %2753 = vmatpush3.msra.mxu1 %v2033_v2  ;;  %v2263_v2 = vld [vmem:[#allocation12 + $0xe8] sm:$0xff] }
 0x90c   : > { %2754 = vmatprep.subr.mxu1 %v2048_v3  ;;  %v2262_v3 = vld [vmem:[#allocation12 + $0xe0] sm:$0xff] }
 0x90d   : > { %2755 = vmatpush3.msra.mxu1 %v2032_v4  ;;  %v2261_v4 = vld [vmem:[#allocation12 + $0xd8] sm:$0xff] }
 0x90e   : > { %2756 = vmatprep.subr.mxu1 %v2047_v5  ;;  %v2260_v5 = vld [vmem:[#allocation12 + $0xd0] sm:$0xff] }
 0x90f   : > { %2757 = vmatpush3.msra.mxu1 %v2031_v6  ;;  %v2259_v6 = vld [vmem:[#allocation12 + $0xc8] sm:$0xff] }
 0x910   : > { %2758 = vmatprep.subr.mxu1 %v2046_v7  ;;  %v2258_v7 = vld [vmem:[#allocation12 + $0xc0] sm:$0xff] }
 0x911   : > { %2759 = vmatpush3.msra.mxu1 %v2030_v8 }
 0x912   : > { %2760 = vmatprep.subr.mxu1 %v2045_v9 }
 0x913   : > { %2761 = vmatpush3.msra.mxu1 %v2029_v10 }
 0x914   : > { %2762 = vmatprep.subr.mxu1 %v2044_v11 }
 0x915   : > { %2763 = vmatpush3.msra.mxu1 %v2028_v13  ;;  %v2257_v13 = vld [vmem:[#allocation12 + $0xb8] sm:$0xff] }
 0x916   : > { %2764 = vmatprep.subr.mxu1 %v2043_v14  ;;  %v2256_v14 = vld [vmem:[#allocation12 + $0xb0] sm:$0xff] }
 0x917   : > { %2765 = vmatpush3.msra.mxu1 %v2027_v16  ;;  %v2255_v16 = vld [vmem:[#allocation12 + $0xa8] sm:$0xff] }
 0x918   : > { %2766 = vmatprep.subr.mxu1 %v2042_v51 }
 0x919   : > { %2767 = vmatpush3.msra.mxu1 %v2026_v52 }
 0x9b2   : > { %v3824_v37 = vpop.f32.mrf.mxu1 }
 0x9b4   : > { %v2847_v38 = vpop.f32.mrf.mxu1 }
 0x9b5   : > { %v2017_v38 = vld [vmem:[#allocation11 + $0xb8] sm:$0xff] }
 0x9ba   : > { %v1905_v39 = vpop.f32.mrf.mxu1 }
 0x9bb   : > { %v1909_v35 = vmul.f32 0.17677669, %v1905_v39  ;;  %v2001_v39 = vld [vmem:[#allocation11 + $0x38] sm:$0xff] }
 0x9bc   : > { %v2854_v28 = vpop.f32.mrf.mxu1 }
 0x9bd   : > { %v1910_v12 = vsel %vm1429_vm1, %v1909_v35, -inf  ;;  %v2000_v28 = vld [vmem:[#allocation11 + $0x30] sm:$0xff] }
 0x9be   : > { %1911 = vmax.xlane.f32.xlu0 %v1910_v12  ;;  %v2015_v12 = vld [vmem:[#allocation11 + $0xa8] sm:$0xff] }
 0xa47   : > { %v1912_v40 = vpop.xlane.xlu0 %1911 }
 0xa48   : > { %v1913_v41 = vsub.f32 %v1909_v35, %v1912_v40  ;;  %v2016_v35 = vld [vmem:[#allocation11 + $0xb0] sm:$0xff]  ;;  %v1999_v40 = vld [vmem:[#allocation11 + $0x28] sm:$0xff] }
 0xa4a   : > { %v1914_v42 = vmul.f32 1.442695, %v1913_v41  ;;  %v2014_v41 = vld [vmem:[#allocation11 + $0xa0] sm:$0xff] }
 0xa4c   : > { %3050 = vpow2.f32 %v1914_v42  ;;  %v1998_v42 = vld [vmem:[#allocation11 + $0x20] sm:$0xff] }
 0xa59   : > { %v3827_v43 = vpop.eup %3050 }
 0xa5a   : > { %v1916_v44 = vsel %vm1429_vm1, %v3827_v43, 0.0 }
 0xa5b   : > { %1917 = vadd.xlane.f32.xlu1 %v1916_v44  ;;  %v1997_v44 = vld [vmem:[#allocation11 + $0x18] sm:$0xff] }
 0xae4   : > { %v1918_v17 = vpop.xlane.xlu1 %1917 }
 0xae5   : > { %3052 = vrcp.f32 %v1918_v17  ;;  %v2254_v17 = vld [vmem:[#allocation12 + $0xa0] sm:$0xff] }
 0xaf2   : > { %v3053_v18 = vpop.eup %3052 }
 0xaf3   : > { %v1920_v19 = vmul.f32 %v3053_v18, %v3827_v43  ;;  %v2013_v43 = vld [vmem:[#allocation11 + $0x98] sm:$0xff] }
 0xaf4   : > { %v2253_v18 = vld [vmem:[#allocation12 + $0x98] sm:$0xff] }
 0xaf5   : > { %2860 = vmatmul.mubr.msk.f32.vlgmr.msra.gmra.mxu0 %vm1429_vm1, %v1920_v19  ;;  %v2252_v19 = vld [vmem:[#allocation12 + $0x90] sm:$0xff] }
 0xaf6   : > { %2702 = vmatpush3.msra.mxu0 %v2009_v20  ;;  %2129 = vmatprep.mubr.f32.mxu0 %v3813_v15  ;;  %v2018_v15 = vld [vmem:[#allocation11 + $0xc0] sm:$0xff]  ;;  %v2251_v20 = vld [vmem:[#allocation12 + $0x88] sm:$0xff] }
 0xaf7   : > { %2703 = vmatprep.subr.mxu0 %v2024_v21  ;;  %v2250_v21 = vld [vmem:[#allocation12 + $0x80] sm:$0xff] }
 0xaf8   : > { %2704 = vmatpush3.msra.mxu0 %v2008_v23  ;;  %v2249_v23 = vld [vmem:[#allocation12 + $0x78] sm:$0xff] }
 0xaf9   : > { %2705 = vmatprep.subr.mxu0 %v2023_v24  ;;  %v2248_v24 = vld [vmem:[#allocation12 + $0x70] sm:$0xff] }
 0xafa   : > { %2706 = vmatpush3.msra.mxu0 %v2007_v25  ;;  %v2247_v25 = vld [vmem:[#allocation12 + $0x68] sm:$0xff] }
 0xafb   : > { %2707 = vmatprep.subr.mxu0 %v2022_v27  ;;  %v2246_v27 = vld [vmem:[#allocation12 + $0x60] sm:$0xff] }
 0xafc   : > { %2708 = vmatpush3.msra.mxu0 %v2006_v29  ;;  %v2245_v29 = vld [vmem:[#allocation12 + $0x58] sm:$0xff] }
 0xafd   : > { %2709 = vmatprep.subr.mxu0 %v2021_v30  ;;  %v2244_v30 = vld [vmem:[#allocation12 + $0x50] sm:$0xff] }
 0xafe   : > { %2710 = vmatpush3.msra.mxu0 %v2005_v31  ;;  %v2243_v31 = vld [vmem:[#allocation12 + $0x48] sm:$0xff] }
 0xaff   : > { %2711 = vmatprep.subr.mxu0 %v2020_v32  ;;  %v2242_v32 = vld [vmem:[#allocation12 + $0x40] sm:$0xff] }
 0xb00   : > { %2712 = vmatpush3.msra.mxu0 %v2004_v33  ;;  %v2241_v33 = vld [vmem:[#allocation12 + $0x38] sm:$0xff] }
 0xb01   : > { %2713 = vmatprep.subr.mxu0 %v2019_v34  ;;  %v2240_v34 = vld [vmem:[#allocation12 + $0x30] sm:$0xff] }
 0xb02   : > { %2714 = vmatpush3.msra.mxu0 %v2003_v22  ;;  %v2239_v22 = vld [vmem:[#allocation12 + $0x28] sm:$0xff] }
 0xb03   : > { %2715 = vmatprep.subr.mxu0 %v2018_v15  ;;  %v2238_v15 = vld [vmem:[#allocation12 + $0x20] sm:$0xff] }
 0xb04   : > { %2716 = vmatpush3.msra.mxu0 %v2002_v36  ;;  %v2237_v36 = vld [vmem:[#allocation12 + $0x18] sm:$0xff] }
 0xb05   : > { %2717 = vmatprep.subr.mxu0 %v2017_v38  ;;  %v2236_v38 = vld [vmem:[#allocation12 + $0x10] sm:$0xff] }
 0xb06   : > { %2718 = vmatpush3.msra.mxu0 %v2001_v39  ;;  %v2235_v39 = vld [vmem:[#allocation12 + $0x8] sm:$0xff] }
 0xb07   : > { %2719 = vmatprep.subr.mxu0 %v2016_v35  ;;  %v2234_v35 = vld [vmem:[#allocation12] sm:$0xff] }
 0xb08   : > { %2720 = vmatpush3.msra.mxu0 %v2000_v28  ;;  %v2390_v28 = vld [vmem:[#allocation14 + $0xf8] sm:$0xff] }
 0xb09   : > { %2721 = vmatprep.subr.mxu0 %v2015_v12  ;;  %v2374_v12 = vld [vmem:[#allocation14 + $0x78] sm:$0xff]  ;;  %2771 = vmatprep.subr.mxu1 %v2390_v28  ;;  %v2669_v28 = vld [vmem:[%s3992_s11] ss:$0 sm:$0xff] }
 0xb0a   : > { %2722 = vmatpush3.msra.mxu0 %v1999_v40  ;;  %v2389_v40 = vld [vmem:[#allocation14 + $0xf0] sm:$0xff] }
 0xb0b   : > { %2723 = vmatprep.subr.mxu0 %v2014_v41  ;;  %v2373_v41 = vld [vmem:[#allocation14 + $0x70] sm:$0xff] }
 0xb0c   : > { %2724 = vmatpush3.msra.mxu0 %v1998_v42  ;;  %v2388_v42 = vld [vmem:[#allocation14 + $0xe8] sm:$0xff] }
 0xb0d   : > { %2725 = vmatprep.subr.mxu0 %v2013_v43  ;;  %v2372_v43 = vld [vmem:[#allocation14 + $0x68] sm:$0xff] }
 0xb0e   : > { %2726 = vmatpush3.msra.mxu0 %v1997_v44 }
 0xb0f   : > { %2727 = vmatprep.subr.mxu0 %v2012_v45 }
 0xb10   : > { %2728 = vmatpush3.msra.mxu0 %v1996_v46 }
 0xb11   : > { %2729 = vmatprep.subr.mxu0 %v2011_v47 }
 0xb12   : > { %2730 = vmatpush3.msra.mxu0 %v1995_v48  ;;  %v2667_v48 = vld [vmem:[%s3988_s8] ss:$0 sm:$0xff]  ;;  %s2491_s8 = sshll.u32 %s555_s23, 4  ;;  %s2492_s8 = int_to_ptr.vmem [resolvable:$true] %s2491_s8 }
 0xb13   : > { %2731 = vmatprep.subr.mxu0 %v2010_v49  ;;  %s3246_s4 = scalar_lea.vmem %s2492_s8, 128  ;;  %p3253_p8 = scmp.lt.s32.totalorder %s2492_s8, %s3251_s10 }
 0xb14   : > { %2732 = vmatpush3.msra.mxu0 %v1994_v50  ;;  %v2668_v50 = vld [vmem:[%s3989_s15] ss:$0 sm:$0xff]  ;;  %s3993_s15 = sld [smem:[#allocation36_spill]]  ;;  %p3247_p6 = scmp.ne.s32.totalorder %s2492_s8, %s3246_s4 }
 0xb15   : > { %2130 = vmatmul.mubr.f32.vlgmr.msra.gmra.mxu0 %v3799_v59  ;;  %p3254_p9 = scmp.lt.s32.totalorder %s3252_s9, %s3246_s4 }
 0xb16   : > { %2342 = vmatprep.mubr.f32.mxu0 %v3394_v26  ;;  %p3248_p4 = pnand %p3247_p6, %p3641_p7 }
 0xb17   : > { %p3255_p10 = por %p3254_p9, %p3253_p8 }
 0xb18   : > { %p3249_p3 = pneg %p3248_p4 }
 0xb1a   : > { %s3994_s21 = smov %s3993_s15  ;;  %s2489_s6 = scalar_lea.hbm %s3993_s15, %s2672_s19 }
 0xb1b   : > { %p3256_p11 = pnand %p3255_p10, %p3249_p3 }
 0xbb5   : > { %v1990_v53 = vpop.f32.mrf.mxu0 }
 0xbb6   : > { %2199 = vmatprep.mubr.f32.mxu1 %v1990_v53  ;;  %v2387_v53 = vld [vmem:[#allocation14 + $0xe0] sm:$0xff] }
 0xbb7   : > { %v2861_v54 = vpop.f32.mrf.mxu0  ;;  %2200 = vmatmul.mubr.f32.vlgmr.msra.gmra.mxu1 %v3824_v37  ;;  %v2265_v37 = vld [vmem:[#allocation12 + $0xf8] sm:$0xff] }
 0xbb8   : > { %2278 = vmatprep.subr.mxu0 %v2265_v37  ;;  %2772 = vmatpush3.msra.mxu1 %v2374_v12  ;;  %v2371_v54 = vld [vmem:[#allocation14 + $0x60] sm:$0xff]  ;;  %v2381_v37 = vld [vmem:[#allocation14 + $0xb0] sm:$0xff] }
 0xbb9   : > { %2279 = vmatpush1.msra.mxu0 %v2264_v1  ;;  %2773 = vmatprep.subr.mxu1 %v2389_v40  ;;  %v2365_v1 = vld [vmem:[#allocation14 + $0x30] sm:$0xff] }
 0xbba   : > { %2280 = vmatprep.subr.mxu0 %v2263_v2  ;;  %2774 = vmatpush3.msra.mxu1 %v2373_v41  ;;  %v2380_v2 = vld [vmem:[#allocation14 + $0xa8] sm:$0xff] }
 0xbbb   : > { %2281 = vmatpush1.msra.mxu0 %v2262_v3  ;;  %2775 = vmatprep.subr.mxu1 %v2388_v42  ;;  %v2364_v3 = vld [vmem:[#allocation14 + $0x28] sm:$0xff] }
 0xbbc   : > { %2282 = vmatprep.subr.mxu0 %v2261_v4  ;;  %2776 = vmatpush3.msra.mxu1 %v2372_v43  ;;  %v2379_v4 = vld [vmem:[#allocation14 + $0xa0] sm:$0xff] }
 0xbbd   : > { %2283 = vmatpush1.msra.mxu0 %v2260_v5  ;;  %2777 = vmatprep.subr.mxu1 %v2387_v53  ;;  %v2363_v5 = vld [vmem:[#allocation14 + $0x20] sm:$0xff] }
 0xbbe   : > { %2284 = vmatprep.subr.mxu0 %v2259_v6  ;;  %2778 = vmatpush3.msra.mxu1 %v2371_v54  ;;  %v2378_v6 = vld [vmem:[#allocation14 + $0x98] sm:$0xff] }
 0xbbf   : > { %2285 = vmatpush1.msra.mxu0 %v2258_v7  ;;  %v2362_v7 = vld [vmem:[#allocation14 + $0x18] sm:$0xff] }
 0xbc0   : > { %2286 = vmatprep.subr.mxu0 %v2257_v13  ;;  %v2375_v13 = vld [vmem:[#allocation14 + $0x80] sm:$0xff] }
 0xbc1   : > { %2287 = vmatpush1.msra.mxu0 %v2256_v14  ;;  %v2359_v14 = vld [vmem:[#allocation14] sm:$0xff] }
 0xbc2   : > { %2288 = vmatprep.subr.mxu0 %v2255_v16  ;;  %v2268_v16 = vlaneseq }
 0xbc3   : > { %2289 = vmatpush1.msra.mxu0 %v2254_v17 }
 0xbc4   : > { %2290 = vmatprep.subr.mxu0 %v2253_v18  ;;  %v2269_v17 = vshrl.u32 %v2268_v16, 7 }
 0xbc5   : > { %2291 = vmatpush1.msra.mxu0 %v2252_v19  ;;  %v2266_v19 = vld [vmem:[%s3990_s28] sm:$0x3]  ;;  %s2476_s28 = scalar_lea.sflag [#allocation5], %s553_s17 }
 0xbc6   : > { %2292 = vmatprep.subr.mxu0 %v2251_v20  ;;  %v2270_v18 = vsub.s32 0, %v2269_v17  ;;  %v2274_v20 = vsub.s32 1, %v2269_v17 }
 0xbc7   : > { %2293 = vmatpush1.msra.mxu0 %v2250_v21 }
 0xbc8   : > { %2294 = vmatprep.subr.mxu0 %v2249_v23  ;;  %v2271_v21 = vrot.slane %v2266_v19, %v2270_v18  ;;  %v2275_v23 = vrot.slane %v2266_v19, %v2274_v20 }
 0xbc9   : > { %2295 = vmatpush1.msra.mxu0 %v2248_v24 }
 0xbca   : > { %2296 = vmatprep.subr.mxu0 %v2247_v25 }
 0xbcb   : > { %2297 = vmatpush1.msra.mxu0 %v2246_v27 }
 0xbcc   : > { %2298 = vmatprep.subr.mxu0 %v2245_v29 }
 0xbcd   : > { %2299 = vmatpush1.msra.mxu0 %v2244_v30 }
 0xbce   : > { %2300 = vmatprep.subr.mxu0 %v2243_v31 }
 0xbcf   : > { %2301 = vmatpush1.msra.mxu0 %v2242_v32 }
 0xbd0   : > { %2302 = vmatprep.subr.mxu0 %v2241_v33 }
 0xbd1   : > { %2303 = vmatpush1.msra.mxu0 %v2240_v34 }
 0xbd2   : > { %2304 = vmatprep.subr.mxu0 %v2239_v22 }
 0xbd3   : > { %2305 = vmatpush1.msra.mxu0 %v2238_v15 }
 0xbd4   : > { %2306 = vmatprep.subr.mxu0 %v2237_v36 }
 0xbd5   : > { %v2733_v55 = vpop.f32.mrf.mxu0  ;;  %2307 = vmatpush1.msra.mxu0 %v2236_v38 }
 0xbd6   : > { %2308 = vmatprep.subr.mxu0 %v2235_v39 }
 0xbd7   : > { %v2734_v56 = vpop.f32.mrf.mxu0  ;;  %2309 = vmatpush1.msra.mxu0 %v2234_v35 }
 0xbd8   : > { %v2735_v57 = vadd.f32 %v2734_v56, %v2733_v55  ;;  %v2386_v55 = vld [vmem:[#allocation14 + $0xd8] sm:$0xff] }
 0xbd9   : > { %2779 = vmatprep.subr.mxu1 %v2386_v55  ;;  %v2370_v56 = vld [vmem:[#allocation14 + $0x58] sm:$0xff] }
 0xbda   : > { %v2132_v59 = vadd.f32 %v2735_v57, %v2666_v58  ;;  %2780 = vmatpush3.msra.mxu1 %v2370_v56  ;;  %v2385_v57 = vld [vmem:[#allocation14 + $0xd0] sm:$0xff] }
 0xbdb   : > { %2781 = vmatprep.subr.mxu1 %v2385_v57  ;;  %v2369_v58 = vld [vmem:[#allocation14 + $0x50] sm:$0xff] }
 0xbdc   : > { %2782 = vmatpush3.msra.mxu1 %v2369_v58 }
 0xc77   : > { %v2768_v60 = vpop.f32.mrf.mxu1 }
 0xc79   : > { %v2769_v26 = vpop.f32.mrf.mxu1 }
 0xc7a   : > { %v2770_v61 = vadd.f32 %v2769_v26, %v2768_v60  ;;  %v2384_v60 = vld [vmem:[#allocation14 + $0xc8] sm:$0xff] }
 0xc7b   : > { %2783 = vmatprep.subr.mxu1 %v2384_v60  ;;  %v2368_v26 = vld [vmem:[#allocation14 + $0x48] sm:$0xff] }
 0xc7c   : > { %v2202_v63 = vadd.f32 %v2770_v61, %v2132_v59  ;;  %2784 = vmatpush3.msra.mxu1 %v2368_v26  ;;  %v2383_v59 = vld [vmem:[#allocation14 + $0xc0] sm:$0xff] }
 0xc7d   : > { %2785 = vmatprep.subr.mxu1 %v2383_v59  ;;  %v2367_v61 = vld [vmem:[#allocation14 + $0x40] sm:$0xff] }
 0xc7e   : > { %v3844_v0 = vadd.f32 %v2202_v63, %v1347_v62  ;;  %2786 = vmatpush3.msra.mxu1 %v2367_v61  ;;  %v2382_v62 = vld [vmem:[#allocation14 + $0xb8] sm:$0xff] }
 0xc7f   : > { %2787 = vmatprep.subr.mxu1 %v2382_v62  ;;  %v2366_v63 = vld [vmem:[#allocation14 + $0x38] sm:$0xff] }
 0xc80   : > { %2208 = vadd.xlane.f32.xlu0 %v3844_v0  ;;  %2788 = vmatpush3.msra.mxu1 %v2366_v63 }
 0xc81   : > { %2789 = vmatprep.subr.mxu1 %v2381_v37 }
 0xc82   : > { %2790 = vmatpush3.msra.mxu1 %v2365_v1 }
 0xc83   : > { %2791 = vmatprep.subr.mxu1 %v2380_v2 }
 0xc84   : > { %2792 = vmatpush3.msra.mxu1 %v2364_v3 }
 0xc85   : > { %2793 = vmatprep.subr.mxu1 %v2379_v4 }
 0xc86   : > { %2794 = vmatpush3.msra.mxu1 %v2363_v5 }
 0xc87   : > { %2795 = vmatprep.subr.mxu1 %v2378_v6 }
 0xc88   : > { %2796 = vmatpush3.msra.mxu1 %v2362_v7 }
 0xd09   : > { %v2209_v8 = vpop.xlane.xlu0 %2208 }
 0xd0a   : > { %v2211_v9 = vmul.f32 0.0078125, %v2209_v8  ;;  %v2377_v8 = vld [vmem:[#allocation14 + $0x90] sm:$0xff] }
 0xd0b   : > { %2797 = vmatprep.subr.mxu1 %v2377_v8 }
 0xd0c   : > { %v3848_v10 = vsub.f32 %v3844_v0, %v2211_v9  ;;  %v2361_v9 = vld [vmem:[#allocation14 + $0x10] sm:$0xff] }
 0xd0d   : > { %2798 = vmatpush3.msra.mxu1 %v2361_v9 }
 0xd0e   : > { %v2213_v11 = vmul.f32 %v3848_v10, %v3848_v10 }
 0xd10   : > { %2214 = vadd.xlane.f32.xlu1 %v2213_v11  ;;  %v2360_v11 = vld [vmem:[#allocation14 + $0x8] sm:$0xff] }
 0xd99   : > { %v2215_v44 = vpop.xlane.xlu1 %2214 }
 0xd9a   : > { %v2216_v45 = vmul.f32 0.0078125, %v2215_v44 }
 0xd9c   : > { %v2217_v46 = vadd.f32 1e-05, %v2216_v45 }
 0xd9e   : > { %3054 = vrsqrt.f32 %v2217_v46 }
 0xdab   : > { %v3055_v47 = vpop.eup %3054 }
 0xdac   : > { %v2219_v49 = vmul.f32 %v3055_v47, %v3848_v10  ;;  %v2376_v10 = vld [vmem:[#allocation14 + $0x88] sm:$0xff] }
 0xdad   : > { %2799 = vmatprep.subr.mxu1 %v2376_v10 }
 0xdae   : > { %v2226_v51 = vmul.f32 %v2667_v48, %v2219_v49  ;;  %2800 = vmatpush3.msra.mxu1 %v2360_v11 }
 0xdaf   : > { %2801 = vmatprep.subr.mxu1 %v2375_v13 }
 0xdb0   : > { %v2233_v52 = vadd.f32 %v2668_v50, %v2226_v51  ;;  %2802 = vmatpush3.msra.mxu1 %v2359_v14 }
 0xdb2   : > { %2343 = vmatmul.mubr.f32.vlgmr.msra.gmra.mxu0 %v2233_v52 }
 0xe72   : > { %v2344_v24 = vpop.f32.mrf.mxu0 }
 0xe73   : > { %v2345_v25 = vadd.f32 %v2344_v24, %v2271_v21 }
 0xe74   : > { %v2346_v27 = vpop.f32.mrf.mxu0 }
 0xe75   : > { %v2351_v29 = vmul.f32 0.70710677, %v2345_v25  ;;  %v2347_v30 = vadd.f32 %v2346_v27, %v2275_v23  ;;  %v2349_v36 = vmul.f32 0.5, %v2345_v25 }
 0xe77   : > { %3056 = verf.f32 %v2351_v29  ;;  %v2352_v31 = vmul.f32 0.70710677, %v2347_v30  ;;  %v2350_v22 = vmul.f32 0.5, %v2347_v30 }
 0xe79   : > { %3058 = verf.f32 %v2352_v31 }
 0xe84   : > { %v3057_v32 = vpop.eup %3056 }
 0xe85   : > { %v2355_v34 = vadd.f32 1.0, %v3057_v32 }
 0xe86   : > { %v3059_v33 = vpop.eup %3058 }
 0xe87   : > { %v2356_v15 = vadd.f32 1.0, %v3059_v33  ;;  %v2357_v39 = vmul.f32 %v2355_v34, %v2349_v36 }
 0xe89   : > { %v2358_v38 = vmul.f32 %v2356_v15, %v2350_v22 }
 0xe8b   : > { %2462 = vmatprep.mubr.f32.mxu1 %v2358_v38 }
 0xe8c   : > { %2463 = vmatmul.mubr.f32.vlgmr.msra.gmra.mxu1 %v2357_v39 }
 0xf4c   : > { %v2803_v35 = vpop.f32.mrf.mxu1 }
 0xf4e   : > { %v2804_v12 = vpop.f32.mrf.mxu1 }
 0xf4f   : > { %v2805_v40 = vadd.f32 %v2804_v12, %v2803_v35 }
 0xf51   : > { %v2465_v41 = vadd.f32 %v2805_v40, %v2669_v28 }
 0xf53   : > { %v2469_v42 = vmul.f32 0.70710677, %v2465_v41  ;;  %v2468_v44 = vmul.f32 0.5, %v2465_v41 }
 0xf55   : > { %3060 = verf.f32 %v2469_v42 }
 0xf62   : > { %v3061_v43 = vpop.eup %3060 }
 0xf63   : > { %v2471_v45 = vadd.f32 1.0, %v3061_v43 }
 0xf65   : > { %v2472_v46 = vmul.f32 %v2471_v45, %v2468_v44 }
 0xf67   : > { %v2473_v47 = vadd.f32 %v2472_v46, %v3844_v0 }
 0xf69   : > { %2474 = vst [vmem:[%s555_s23] sm:$0xff] %v2473_v47 }
 0xf6a   : > { %3259 = shalt.err (!%p3256_p11)
}
 0xf6b   : > { %s3260_s11 = scalar_lea.hbm %s2489_s6, 128  ;;  %s3264_s23 = scalar_lea.hbm %s3994_s21, 512 }
 0xf6c   : > { %p3261_p12 = scmp.ne.s32.totalorder %s2489_s6, %s3260_s11  ;;  %p3265_p2 = scmp.lt.s32.totalorder %s2489_s6, %s3994_s21 }
 0xf6d   : > { %p3266_p5 = scmp.lt.s32.totalorder %s3264_s23, %s3260_s11 }
 0xf6e   : > { %p3262_p1 = pnand %p3261_p12, %p3641_p7 }
 0xf6f   : > { %p3267_p6 = por %p3266_p5, %p3265_p2 }
 0xf70   : > { %p3263_p13 = pneg %p3262_p1 }
 0xf72   : > { %p3268_p4 = pnand %p3267_p6, %p3263_p13 }
 0xf74   : > { %3271 = shalt.err (!%p3268_p4)
}
 0xf75   : > { %2888 = dma.vmem_to_hbm [thread:$0]  (%p3641_p7), %s2492_s8, 128, %s2489_s6, %s2476_s28  }
 0xf76 PF: > { %p2930_p3 = scmp.ge.s32.totalorder %s3378_s18, 2  ;;  %s2503_s19 = sand.u32 1, %s3338_s25  }
 0xf77   : > { %s2504_s7 = scalar_lea.sflag [#allocation5], %s2503_s19 }
 0xf78   : > { %p2914_p8 = pnand %p2930_p3, %p3651_p0 }
 0xf7a   : > { %p2915_p9 = pneg %p2914_p8 }
 0xf7c   : > { %3333 = dma.done.wait (%p2915_p9), %s2504_s7, 128  }
 0xf7d   : > { %3335 = vsyncadd (%p2915_p9), %s2504_s7, 4294967168  ;;  %s32_s18 = sadd.s32 1, %s3378_s18   ;;  %s3995_s15 = sld [smem:[#allocation22_spill]] }
 0xf7e   : > { %p29_p10 = scmp.ge.s32.totalorder %s32_s18, 6   ;;  %s3996_s24 = sld [smem:[#allocation23_spill]] }
 0xf7f   : > { %s3997_s17 = sld [smem:[#allocation24_spill]]  ;;  %s3998_s25 = smov %s3342_s26 }
 0xf80   : > { %s3999_s26 = smov %s3346_s27  ;;  %s4000_s27 = smov %s3649_s12 }
 0xf81   : > { %s4001_s28 = smov %s3354_s29  ;;  %s4002_s29 = smov %s3358_s30 }
 0xf82   : > { %s4003_s30 = smov %s3646_s2  ;;  %s4004_s14 = smov %s3370_s16 }
 0xf83   :  { %31 = sbr.rel (!%p29_p10) target bundleno = 25 (0x19), region = 147 }
 0xf84   : > { %s4005_s16 = smov %s3996_s24 }
 0xf88   :  { %2509 = vsyncpa [#allocation4], 1 }
 0xf89   :  { %2511 = vsyncpa [#allocation4 + $0x1], 1 }
 0xf8a   :  { %2512 = vsyncpa [#allocation7], 1 }
 0xf8b   :  { %2513 = vsyncpa [#allocation10], 1 }
 0xf8c   :  { %2514 = vsyncpa [#allocation13], 1 }
 0xf8d   :  { %2515 = vsyncpa [#allocation5], 1 }
 0xf8e   :  { %2517 = vsyncpa [#allocation5 + $0x1], 1 }

</bundles_post_ra>
